<compile_context>
chip_gen: v5e
topology: v5e:2x2
jax: 0.10.0
libtpu: 0.0.40
codegen_flags: <defaults>
</compile_context>

<pallas_src>
import jax
import jax.numpy as jnp
import numpy as np
from jax.experimental import pallas as pl
from jax.experimental.pallas import tpu as pltpu


def _round_up(x, m):
    return (x + m - 1) // m * m


def _lane_pad(d):
    # 256-alignment fills the 256x256 MXU on v6e/v7x; keep 128 for small dims
    # so tiny channel counts do not double their padding waste (v5e MXU is 128).
    return _round_up(d, 256) if d > 128 else 128


# ---------------------------------------------------------------------------
# Pallas kernels
# ---------------------------------------------------------------------------
def _matmul_stats_kernel(x_ref, w_ref, y_ref, stats_ref, acc_ref):
    """K-tiled conv-as-matmul for one M tile + BN partial statistics.

    x_ref     : (TM, TK)  bf16  im2col tile (conv taps folded into K)
    w_ref     : (TK, Cp)  bf16  folded weight K-slice
    y_ref     : (TM, Cp)  bf16  pre-BN conv output tile (written at last K step)
    stats_ref : (8, Cp)   f32   row 0 = sum(y), row 1 = sum(y*y) over this tile
    acc_ref   : (TM, Cp)  f32   VMEM accumulator (persists across K steps)
    """
    k = pl.program_id(1)

    @pl.when(k == 0)
    def _():
        acc_ref[...] = jnp.zeros_like(acc_ref)

    acc_ref[...] += jnp.dot(x_ref[...], w_ref[...],
                            preferred_element_type=jnp.float32)

    @pl.when(k == pl.num_programs(1) - 1)
    def _():
        y = acc_ref[...]                         # f32: stats stay full precision
        y_ref[...] = y.astype(y_ref.dtype)       # bf16 store (halves HBM traffic)
        s = jnp.sum(y, axis=0, keepdims=True)
        ss = jnp.sum(y * y, axis=0, keepdims=True)
        row = jax.lax.broadcasted_iota(jnp.int32, stats_ref.shape, 0)
        stats_ref[...] = jnp.where(row == 0, s, jnp.where(row == 1, ss, 0.0))


def _affine_relu_kernel(y_ref, scale_ref, shift_ref, o_ref):
    """Per-channel affine (BN folded into scale/shift) + ReLU on one M tile."""
    y = y_ref[...].astype(jnp.float32)
    o_ref[...] = jnp.maximum(y * scale_ref[...] + shift_ref[...],
                             0.0).astype(o_ref.dtype)


# ---------------------------------------------------------------------------
# DilatedConvBlock: Conv2d(dilated, bias=False) -> BatchNorm2d(train) -> ReLU
# Input / output are NHWC; intermediates are bf16.
# ---------------------------------------------------------------------------
def conv_bn_relu_block(x_nhwc, weight_oihw, gamma, beta, *, padding, dilation,
                       eps=1e-5, tile_m=512, tile_k_max=1024,
                       out_dtype=jnp.bfloat16):
    N, H, W, Cin = x_nhwc.shape
    Cout, Cin_w, KH, KW = weight_oihw.shape
    assert Cin == Cin_w

    H_out = H + 2 * padding - dilation * (KH - 1)
    W_out = W + 2 * padding - dilation * (KW - 1)
    M = N * H_out * W_out
    Ktot = KH * KW * Cin

    # --- layout glue, entirely in bf16 so the im2col blow-up costs half ---
    xb = x_nhwc.astype(jnp.bfloat16)
    if KH == 1 and KW == 1 and padding == 0:
        x2d = xb.reshape(M, Cin)                 # 1x1 conv: im2col is a reshape
    else:
        xp = jnp.pad(xb, ((0, 0), (padding, padding), (padding, padding), (0, 0)))
        cols = []
        for kh in range(KH):
            for kw in range(KW):
                sl = xp[:, kh * dilation:kh * dilation + H_out,
                           kw * dilation:kw * dilation + W_out, :]
                cols.append(sl.reshape(M, Cin))
        x2d = jnp.concatenate(cols, axis=1)      # (M, KH*KW*Cin)
    # TODO(synk): for Cin >= ~128 drop the materialized im2col and make the
    # KH*KW taps an extra "arbitrary" grid axis indexing the padded NHWC input
    # directly (saves the 9x HBM blow-up on the 3x3 dilated branches).

    # weight (Cout, Cin, KH, KW) -> (KH*KW*Cin, Cout), matching tap order.
    w2d = jnp.transpose(weight_oihw.astype(jnp.bfloat16),
                        (2, 3, 1, 0)).reshape(Ktot, Cout)

    # --- MXU / lane-friendly padded sizes + K tiling ---
    Cp = _lane_pad(Cout)
    Kp = _lane_pad(Ktot)
    if Kp <= tile_k_max:
        TK = Kp
    else:
        TK = 128
        for cand in (tile_k_max, 512, 256, 128):
            if Kp % cand == 0:
                TK = cand
                break
    nk = Kp // TK

    # M tiling: cap at tile_m, but aim for >=4 grid steps so the "parallel"
    # axis can actually be sharded across both v7x TensorCores.
    TM = min(tile_m, max(128, _round_up(pl.cdiv(M, 4), 128)))
    q = pl.cdiv(M, TM)
    Mp = q * TM
    # pass-2 tile: largest multiple of TM that divides Mp and is <= 2048
    # (pass 2 is purely HBM-bound; bigger tiles amortize per-step overhead).
    f = 1
    for cand in range(min(q, max(1, 2048 // TM)), 0, -1):
        if q % cand == 0:
            f = cand
            break
    TM2 = TM * f

    x2d = jnp.pad(x2d, ((0, Mp - M), (0, Kp - Ktot)))
    w2d = jnp.pad(w2d, ((0, Kp - Ktot), (0, Cp - Cout)))

    # Explicit VMEM budget from the real tile footprint (double-buffered ins/outs
    # + f32 accumulator), with headroom; capped below v7x's 64 MiB physical.
    vmem_bytes = (2 * TM * TK * 2 +          # x tile (bf16, double-buffered)
                  2 * TK * Cp * 2 +          # w tile (bf16, double-buffered)
                  TM * Cp * 4 +              # f32 accumulator scratch
                  2 * TM * Cp * 2 +          # y output tile (bf16, dbl-buffered)
                  2 * 8 * Cp * 4)            # stats output tile
    vmem_limit = int(min(64 * 2**20, max(8 * 2**20, vmem_bytes * 3 // 2)))

    cost = pl.CostEstimate(
        flops=2 * Mp * Kp * Cp,
        transcendentals=0,
        bytes_accessed=Mp * Kp * 2 + q * Kp * Cp * 2 + Mp * Cp * 2 + q * 8 * Cp * 4,
    )

    # Pass 1: K-tiled matmul + per-M-tile BN partials.  Padded rows/cols are
    # zero so they contribute nothing to the sums; true M is used as divisor.
    y_pad, stats = pl.pallas_call(
        _matmul_stats_kernel,
        out_shape=(
            jax.ShapeDtypeStruct((Mp, Cp), jnp.bfloat16),
            jax.ShapeDtypeStruct((q * 8, Cp), jnp.float32),
        ),
        grid_spec=pltpu.PrefetchScalarGridSpec(
            num_scalar_prefetch=0,
            grid=(q, nk),
            in_specs=[
                pl.BlockSpec((TM, TK), lambda i, k: (i, k)),
                pl.BlockSpec((TK, Cp), lambda i, k: (k, 0)),
            ],
            out_specs=(
                pl.BlockSpec((TM, Cp), lambda i, k: (i, 0)),
                pl.BlockSpec((8, Cp), lambda i, k: (i, 0)),
            ),
            scratch_shapes=[pltpu.VMEM((TM, Cp), jnp.float32)],
        ),
        compiler_params=pltpu.CompilerParams(
            dimension_semantics=("parallel", "arbitrary"),
            vmem_limit_bytes=vmem_limit,
        ),
        cost_estimate=cost,
    )(x2d, w2d)

    # --- global BN stats from per-tile partials (f32 single-pass sum/sumsq) ---
    stats = stats.reshape(q, 8, Cp)
    mean = jnp.sum(stats[:, 0, :], axis=0) / M
    var = jnp.maximum(jnp.sum(stats[:, 1, :], axis=0) / M - mean * mean, 0.0)
    inv_std = jax.lax.rsqrt(var + eps)
    g = jnp.pad(gamma.astype(jnp.float32), (0, Cp - Cout))
    b = jnp.pad(beta.astype(jnp.float32), (0, Cp - Cout))
    scale = (g * inv_std).reshape(1, Cp)
    shift = (b - mean * g * inv_std).reshape(1, Cp)

    # Pass 2: scale/shift (folded BN) + ReLU, tiled over M with larger tiles.
    out_pad = pl.pallas_call(
        _affine_relu_kernel,
        out_shape=jax.ShapeDtypeStruct((Mp, Cp), out_dtype),
        grid_spec=pltpu.PrefetchScalarGridSpec(
            num_scalar_prefetch=0,
            grid=(Mp // TM2,),
            in_specs=[
                pl.BlockSpec((TM2, Cp), lambda i: (i, 0)),
                pl.BlockSpec((1, Cp), lambda i: (0, 0)),
                pl.BlockSpec((1, Cp), lambda i: (0, 0)),
            ],
            out_specs=pl.BlockSpec((TM2, Cp), lambda i: (i, 0)),
        ),
        compiler_params=pltpu.CompilerParams(
            dimension_semantics=("parallel",),
        ),
    )(y_pad, scale, shift)

    return out_pad[:M, :Cout].reshape(N, H_out, W_out, Cout)   # NHWC


# ---------------------------------------------------------------------------
# ASPP forward (NCHW in / NCHW out to match the PyTorch module; NHWC inside)
# ---------------------------------------------------------------------------
def aspp_forward(x_nchw, p):
    N, Cin, H, W = x_nchw.shape
    Cout = p["w1"].shape[0]

    # single NCHW -> NHWC transpose at the entry; NHWC end-to-end afterwards.
    x = jnp.transpose(x_nchw, (0, 2, 3, 1))

    x1 = conv_bn_relu_block(x, p["w1"], p["g1"], p["b1"], padding=0, dilation=1)
    x6 = conv_bn_relu_block(x, p["w6"], p["g6"], p["b6"], padding=6, dilation=6)
    x12 = conv_bn_relu_block(x, p["w12"], p["g12"], p["b12"], padding=12, dilation=12)
    x18 = conv_bn_relu_block(x, p["w18"], p["g18"], p["b18"], padding=18, dilation=18)

    # avg_pool branch (AdaptiveAvgPool2d(1) -> 1x1 conv, no bias -> ReLU);
    # bilinear upsampling of a 1x1 map with align_corners=False is a constant
    # broadcast over (H, W).  The <=N x Cin matmul stays in plain jnp — a
    # dedicated pallas_call here is pure launch overhead (perf review).
    pooled = jnp.mean(x, axis=(1, 2))                              # (N, Cin) f32
    pooled = jnp.maximum(pooled @ p["w_pool"].reshape(Cout, Cin).T, 0.0)
    avg = jnp.broadcast_to(pooled.astype(jnp.bfloat16)[:, None, None, :],
                           (N, H, W, Cout))

    # lane-axis concat (NHWC) — no re-layout needed for the final 1x1 block.
    cat = jnp.concatenate([x1, x6, x12, x18, avg], axis=-1)        # (N,H,W,5*Cout)
    out = conv_bn_relu_block(cat, p["w_out"], p["g_out"], p["b_out"],
                             padding=0, dilation=1, out_dtype=jnp.float32)
    return jnp.transpose(out, (0, 3, 1, 2))                        # back to NCHW


# ---------------------------------------------------------------------------
# Pure-JAX reference (PyTorch semantics)
# ---------------------------------------------------------------------------
def _ref_block(x, w, g, b, *, padding, dilation, eps=1e-5):
    y = jax.lax.conv_general_dilated(
        x.astype(jnp.float32), w.astype(jnp.float32),
        window_strides=(1, 1),
        padding=[(padding, padding), (padding, padding)],
        rhs_dilation=(dilation, dilation),
        dimension_numbers=("NCHW", "OIHW", "NCHW"),
        preferred_element_type=jnp.float32)
    mean = y.mean(axis=(0, 2, 3), keepdims=True)
    var = ((y - mean) ** 2).mean(axis=(0, 2, 3), keepdims=True)
    yn = (y - mean) * jax.lax.rsqrt(var + eps)
    yn = yn * g.reshape(1, -1, 1, 1) + b.reshape(1, -1, 1, 1)
    return jnp.maximum(yn, 0.0)


def _ref_aspp(x, p):
    N, Cin, H, W = x.shape
    Cout = p["w1"].shape[0]
    x1 = _ref_block(x, p["w1"], p["g1"], p["b1"], padding=0, dilation=1)
    x6 = _ref_block(x, p["w6"], p["g6"], p["b6"], padding=6, dilation=6)
    x12 = _ref_block(x, p["w12"], p["g12"], p["b12"], padding=12, dilation=12)
    x18 = _ref_block(x, p["w18"], p["g18"], p["b18"], padding=18, dilation=18)
    pooled = x.mean(axis=(2, 3))
    pooled = jnp.maximum(pooled @ p["w_pool"].reshape(Cout, Cin).T, 0.0)
    avg = jnp.broadcast_to(pooled[:, :, None, None], (N, Cout, H, W))
    cat = jnp.concatenate([x1, x6, x12, x18, avg], axis=1)
    return _ref_block(cat, p["w_out"], p["g_out"], p["b_out"], padding=0, dilation=1)


if __name__ == "__main__":
    # ASPP(in_channels=4, out_channels=8) on x of shape (2, 4, 16, 16).
    N, Cin, H, W = 2, 4, 16, 16
    Cout = 8

    keys = jax.random.split(jax.random.PRNGKey(0), 18)
    x = jax.random.normal(keys[0], (N, Cin, H, W), dtype=jnp.float32)

    def conv_w(k, cout, cin, ks):
        return jax.random.normal(k, (cout, cin, ks, ks), dtype=jnp.float32) * 0.1

    p = {
        "w1": conv_w(keys[1], Cout, Cin, 1),
        "w6": conv_w(keys[2], Cout, Cin, 3),
        "w12": conv_w(keys[3], Cout, Cin, 3),
        "w18": conv_w(keys[4], Cout, Cin, 3),
        "w_pool": conv_w(keys[5], Cout, Cin, 1),
        "w_out": conv_w(keys[6], Cout, Cout * 5, 1),
    }
    for i, nm in enumerate(["1", "6", "12", "18", "_out"]):
        p["g" + nm] = 1.0 + 0.1 * jax.random.normal(keys[7 + i], (Cout,), dtype=jnp.float32)
        p["b" + nm] = 0.1 * jax.random.normal(keys[12 + i], (Cout,), dtype=jnp.float32)

    out = jax.jit(aspp_forward)(x, p)
    out = jax.block_until_ready(out)

    ref = _ref_aspp(x, p)
    np.testing.assert_allclose(np.asarray(out), np.asarray(ref), atol=5e-2, rtol=5e-2)

    print("KERNEL_OK")
</pallas_src>

<mosaic_0001>
module attributes {stable_mosaic.version = 11 : i64} {
  func.func @_matmul_stats_kernel(%arg0: i32, %arg1: i32, %arg2: memref<128x128xbf16, #tpu.memory_space<vmem>>, %arg3: memref<128x128xbf16, #tpu.memory_space<vmem>>, %arg4: memref<128x128xbf16, #tpu.memory_space<vmem>>, %arg5: memref<8x128xf32, #tpu.memory_space<vmem>>, %arg6: memref<128x128xf32, #tpu.memory_space<vmem>>) attributes {dimension_semantics = [#tpu.dimension_semantics<parallel>, #tpu.dimension_semantics<arbitrary>], iteration_bounds = array<i64: 4, 1>, scalar_prefetch = 0 : i64, scratch_operands = 1 : i64, tpu.core_type = #tpu.core_type<tc>, window_params = [{transform_indices = @transform_0, window_bounds = array<i64: 128, 128>}, {transform_indices = @transform_1, window_bounds = array<i64: 128, 128>}, {transform_indices = @transform_2, window_bounds = array<i64: 128, 128>}, {transform_indices = @transform_3, window_bounds = array<i64: 8, 128>}]} {
    %c0_i32 = arith.constant 0 : i32
    %0 = arith.cmpi eq, %arg1, %c0_i32 : i32
    %1 = arith.extui %0 : i1 to i32
    %c0_i32_0 = arith.constant 0 : i32
    %2 = arith.cmpi ne, %1, %c0_i32_0 : i32
    scf.if %2 {
      %cst_10 = arith.constant 0.000000e+00 : f32
      %12 = vector.broadcast %cst_10 : f32 to vector<128x128xf32>
      %c0_11 = arith.constant 0 : index
      %c0_12 = arith.constant 0 : index
      %13 = vector.load %arg6[%c0_11, %c0_12] : memref<128x128xf32, #tpu.memory_space<vmem>>, vector<128x128xf32>
      tpu.vector_store %arg6[%c0_11, %c0_12], %12 {strides = array<i32>} : memref<128x128xf32, #tpu.memory_space<vmem>>, vector<128x128xf32>,
    } else {
    }
    %c0 = arith.constant 0 : index
    %c0_1 = arith.constant 0 : index
    %3 = vector.load %arg6[%c0, %c0_1] : memref<128x128xf32, #tpu.memory_space<vmem>>, vector<128x128xf32>
    %c0_2 = arith.constant 0 : index
    %c0_3 = arith.constant 0 : index
    %4 = vector.load %arg2[%c0_2, %c0_3] : memref<128x128xbf16, #tpu.memory_space<vmem>>, vector<128x128xbf16>
    %c0_4 = arith.constant 0 : index
    %c0_5 = arith.constant 0 : index
    %5 = vector.load %arg3[%c0_4, %c0_5] : memref<128x128xbf16, #tpu.memory_space<vmem>>, vector<128x128xbf16>
    %cst = arith.constant dense<0.000000e+00> : vector<128x128xf32>
    %6 = tpu.matmul %4, %5, %cst {dimension_numbers = #tpu.dot_dimension_numbers<[1], [0], [0], [1], [0, 0, 1, 1], [], []>} : vector<128x128xbf16>, vector<128x128xbf16>, vector<128x128xf32> -> vector<128x128xf32>
    %7 = arith.addf %3, %6 : vector<128x128xf32>
    %c0_6 = arith.constant 0 : index
    %c0_7 = arith.constant 0 : index
    %8 = vector.load %arg6[%c0_6, %c0_7] : memref<128x128xf32, #tpu.memory_space<vmem>>, vector<128x128xf32>
    tpu.vector_store %arg6[%c0_6, %c0_7], %7 {strides = array<i32>} : memref<128x128xf32, #tpu.memory_space<vmem>>, vector<128x128xf32>,
    %c0_i32_8 = arith.constant 0 : i32
    %9 = arith.cmpi eq, %arg1, %c0_i32_8 : i32
    %10 = arith.extui %9 : i1 to i32
    %c0_i32_9 = arith.constant 0 : i32
    %11 = arith.cmpi ne, %10, %c0_i32_9 : i32
    scf.if %11 {
      %c0_10 = arith.constant 0 : index
      %c0_11 = arith.constant 0 : index
      %12 = vector.load %arg6[%c0_10, %c0_11] : memref<128x128xf32, #tpu.memory_space<vmem>>, vector<128x128xf32>
      %13 = arith.truncf %12 : vector<128x128xf32> to vector<128x128xbf16>
      %c0_12 = arith.constant 0 : index
      %c0_13 = arith.constant 0 : index
      %14 = vector.load %arg4[%c0_12, %c0_13] : memref<128x128xbf16, #tpu.memory_space<vmem>>, vector<128x128xbf16>
      tpu.vector_store %arg4[%c0_12, %c0_13], %13 {strides = array<i32>} : memref<128x128xbf16, #tpu.memory_space<vmem>>, vector<128x128xbf16>,
      %cst_14 = arith.constant dense<0.000000e+00> : vector<128xf32>
      %15 = vector.multi_reduction <add>, %12, %cst_14 [0] : vector<128x128xf32> to vector<128xf32>
      %16 = vector.shape_cast %15 : vector<128xf32> to vector<1x128xf32>
      %17 = arith.mulf %12, %12 : vector<128x128xf32>
      %cst_15 = arith.constant dense<0.000000e+00> : vector<128xf32>
      %18 = vector.multi_reduction <add>, %17, %cst_15 [0] : vector<128x128xf32> to vector<128xf32>
      %19 = vector.shape_cast %18 : vector<128xf32> to vector<1x128xf32>
      %20 = tpu.iota {dimensions = array<i32: 0>} : vector<8x128xi32>
      %c0_i32_16 = arith.constant 0 : i32
      %21 = vector.broadcast %c0_i32_16 : i32 to vector<8x128xi32>
      %22 = arith.cmpi eq, %20, %21 : vector<8x128xi32>
      %c1_i32 = arith.constant 1 : i32
      %23 = vector.broadcast %c1_i32 : i32 to vector<8x128xi32>
      %24 = arith.cmpi eq, %20, %23 : vector<8x128xi32>
      %cst_17 = arith.constant 0.000000e+00 : f32
      %25 = vector.shape_cast %19 : vector<1x128xf32> to vector<1x128xf32>
      %26 = vector.broadcast %25 : vector<1x128xf32> to vector<8x128xf32>
      %27 = vector.broadcast %cst_17 : f32 to vector<8x128xf32>
      %28 = arith.select %24, %26, %27 : vector<8x128xi1>, vector<8x128xf32>
      %29 = vector.shape_cast %16 : vector<1x128xf32> to vector<1x128xf32>
      %30 = vector.broadcast %29 : vector<1x128xf32> to vector<8x128xf32>
      %31 = arith.select %22, %30, %28 : vector<8x128xi1>, vector<8x128xf32>
      %c0_18 = arith.constant 0 : index
      %c0_19 = arith.constant 0 : index
      %32 = vector.load %arg5[%c0_18, %c0_19] : memref<8x128xf32, #tpu.memory_space<vmem>>, vector<8x128xf32>
      tpu.vector_store %arg5[%c0_18, %c0_19], %31 {strides = array<i32>} : memref<8x128xf32, #tpu.memory_space<vmem>>, vector<8x128xf32>,
    } else {
    }
    return
  }
  func.func @transform_0(%arg0: i32, %arg1: i32) -> (i32, i32) {
    %c0_i32 = arith.constant 0 : i32
    return %arg0, %arg1 : i32, i32
  }
  func.func @transform_1(%arg0: i32, %arg1: i32) -> (i32, i32) {
    %c0_i32 = arith.constant 0 : i32
    %c0_i32_0 = arith.constant 0 : i32
    return %arg1, %c0_i32 : i32, i32
  }
  func.func @transform_2(%arg0: i32, %arg1: i32) -> (i32, i32) {
    %c0_i32 = arith.constant 0 : i32
    %c0_i32_0 = arith.constant 0 : i32
    return %arg0, %c0_i32 : i32, i32
  }
  func.func @transform_3(%arg0: i32, %arg1: i32) -> (i32, i32) {
    %c0_i32 = arith.constant 0 : i32
    %c0_i32_0 = arith.constant 0 : i32
    return %arg0, %c0_i32 : i32, i32
  }
}

module attributes {stable_mosaic.version = 11 : i64} {
  func.func @_affine_relu_kernel(%arg0: i32, %arg1: memref<512x128xbf16, #tpu.memory_space<vmem>>, %arg2: memref<1x128xf32, #tpu.memory_space<vmem>>, %arg3: memref<1x128xf32, #tpu.memory_space<vmem>>, %arg4: memref<512x128xbf16, #tpu.memory_space<vmem>>) attributes {dimension_semantics = [#tpu.dimension_semantics<parallel>], iteration_bounds = array<i64: 1>, scalar_prefetch = 0 : i64, scratch_operands = 0 : i64, tpu.core_type = #tpu.core_type<tc>, window_params = [{transform_indices = @transform_0, window_bounds = array<i64: 512, 128>}, {pipeline_mode = #tpu.pipeline_mode<synchronous>, transform_indices = @transform_1, window_bounds = array<i64: 1, 128>}, {pipeline_mode = #tpu.pipeline_mode<synchronous>, transform_indices = @transform_2, window_bounds = array<i64: 1, 128>}, {transform_indices = @transform_3, window_bounds = array<i64: 512, 128>}]} {
    %c0 = arith.constant 0 : index
    %c0_0 = arith.constant 0 : index
    %0 = vector.load %arg1[%c0, %c0_0] : memref<512x128xbf16, #tpu.memory_space<vmem>>, vector<512x128xbf16>
    %1 = arith.extf %0 : vector<512x128xbf16> to vector<512x128xf32>
    %c0_1 = arith.constant 0 : index
    %c0_2 = arith.constant 0 : index
    %2 = vector.load %arg2[%c0_1, %c0_2] : memref<1x128xf32, #tpu.memory_space<vmem>>, vector<1x128xf32>
    %3 = vector.broadcast %2 : vector<1x128xf32> to vector<512x128xf32>
    %4 = arith.mulf %1, %3 : vector<512x128xf32>
    %c0_3 = arith.constant 0 : index
    %c0_4 = arith.constant 0 : index
    %5 = vector.load %arg3[%c0_3, %c0_4] : memref<1x128xf32, #tpu.memory_space<vmem>>, vector<1x128xf32>
    %6 = vector.broadcast %5 : vector<1x128xf32> to vector<512x128xf32>
    %7 = arith.addf %4, %6 : vector<512x128xf32>
    %cst = arith.constant 0.000000e+00 : f32
    %8 = vector.broadcast %cst : f32 to vector<512x128xf32>
    %9 = arith.maximumf %7, %8 : vector<512x128xf32>
    %10 = arith.truncf %9 : vector<512x128xf32> to vector<512x128xbf16>
    %c0_5 = arith.constant 0 : index
    %c0_6 = arith.constant 0 : index
    %11 = vector.load %arg4[%c0_5, %c0_6] : memref<512x128xbf16, #tpu.memory_space<vmem>>, vector<512x128xbf16>
    tpu.vector_store %arg4[%c0_5, %c0_6], %10 {strides = array<i32>} : memref<512x128xbf16, #tpu.memory_space<vmem>>, vector<512x128xbf16>,
    return
  }
  func.func @transform_0(%arg0: i32) -> (i32, i32) {
    %c0_i32 = arith.constant 0 : i32
    %c0_i32_0 = arith.constant 0 : i32
    return %arg0, %c0_i32 : i32, i32
  }
  func.func @transform_1(%arg0: i32) -> (i32, i32) {
    %c0_i32 = arith.constant 0 : i32
    %c0_i32_0 = arith.constant 0 : i32
    %c0_i32_1 = arith.constant 0 : i32
    return %c0_i32, %c0_i32_0 : i32, i32
  }
  func.func @transform_2(%arg0: i32) -> (i32, i32) {
    %c0_i32 = arith.constant 0 : i32
    %c0_i32_0 = arith.constant 0 : i32
    %c0_i32_1 = arith.constant 0 : i32
    return %c0_i32, %c0_i32_0 : i32, i32
  }
  func.func @transform_3(%arg0: i32) -> (i32, i32) {
    %c0_i32 = arith.constant 0 : i32
    %c0_i32_0 = arith.constant 0 : i32
    return %arg0, %c0_i32 : i32, i32
  }
}

module attributes {stable_mosaic.version = 11 : i64} {
  func.func @_affine_relu_kernel(%arg0: i32, %arg1: memref<512x128xbf16, #tpu.memory_space<vmem>>, %arg2: memref<1x128xf32, #tpu.memory_space<vmem>>, %arg3: memref<1x128xf32, #tpu.memory_space<vmem>>, %arg4: memref<512x128xf32, #tpu.memory_space<vmem>>) attributes {dimension_semantics = [#tpu.dimension_semantics<parallel>], iteration_bounds = array<i64: 1>, scalar_prefetch = 0 : i64, scratch_operands = 0 : i64, tpu.core_type = #tpu.core_type<tc>, window_params = [{transform_indices = @transform_0, window_bounds = array<i64: 512, 128>}, {pipeline_mode = #tpu.pipeline_mode<synchronous>, transform_indices = @transform_1, window_bounds = array<i64: 1, 128>}, {pipeline_mode = #tpu.pipeline_mode<synchronous>, transform_indices = @transform_2, window_bounds = array<i64: 1, 128>}, {transform_indices = @transform_3, window_bounds = array<i64: 512, 128>}]} {
    %c0 = arith.constant 0 : index
    %c0_0 = arith.constant 0 : index
    %0 = vector.load %arg1[%c0, %c0_0] : memref<512x128xbf16, #tpu.memory_space<vmem>>, vector<512x128xbf16>
    %1 = arith.extf %0 : vector<512x128xbf16> to vector<512x128xf32>
    %c0_1 = arith.constant 0 : index
    %c0_2 = arith.constant 0 : index
    %2 = vector.load %arg2[%c0_1, %c0_2] : memref<1x128xf32, #tpu.memory_space<vmem>>, vector<1x128xf32>
    %3 = vector.broadcast %2 : vector<1x128xf32> to vector<512x128xf32>
    %4 = arith.mulf %1, %3 : vector<512x128xf32>
    %c0_3 = arith.constant 0 : index
    %c0_4 = arith.constant 0 : index
    %5 = vector.load %arg3[%c0_3, %c0_4] : memref<1x128xf32, #tpu.memory_space<vmem>>, vector<1x128xf32>
    %6 = vector.broadcast %5 : vector<1x128xf32> to vector<512x128xf32>
    %7 = arith.addf %4, %6 : vector<512x128xf32>
    %cst = arith.constant 0.000000e+00 : f32
    %8 = vector.broadcast %cst : f32 to vector<512x128xf32>
    %9 = arith.maximumf %7, %8 : vector<512x128xf32>
    %c0_5 = arith.constant 0 : index
    %c0_6 = arith.constant 0 : index
    %10 = vector.load %arg4[%c0_5, %c0_6] : memref<512x128xf32, #tpu.memory_space<vmem>>, vector<512x128xf32>
    tpu.vector_store %arg4[%c0_5, %c0_6], %9 {strides = array<i32>} : memref<512x128xf32, #tpu.memory_space<vmem>>, vector<512x128xf32>,
    return
  }
  func.func @transform_0(%arg0: i32) -> (i32, i32) {
    %c0_i32 = arith.constant 0 : i32
    %c0_i32_0 = arith.constant 0 : i32
    return %arg0, %c0_i32 : i32, i32
  }
  func.func @transform_1(%arg0: i32) -> (i32, i32) {
    %c0_i32 = arith.constant 0 : i32
    %c0_i32_0 = arith.constant 0 : i32
    %c0_i32_1 = arith.constant 0 : i32
    return %c0_i32, %c0_i32_0 : i32, i32
  }
  func.func @transform_2(%arg0: i32) -> (i32, i32) {
    %c0_i32 = arith.constant 0 : i32
    %c0_i32_0 = arith.constant 0 : i32
    %c0_i32_1 = arith.constant 0 : i32
    return %c0_i32, %c0_i32_0 : i32, i32
  }
  func.func @transform_3(%arg0: i32) -> (i32, i32) {
    %c0_i32 = arith.constant 0 : i32
    %c0_i32_0 = arith.constant 0 : i32
    return %arg0, %c0_i32 : i32, i32
  }
}

</mosaic_0001>

<bundles_post_ra>
// kernel: aspp_forward.15
= control target key start
LH: loop header
LB: loop body
LE: loop exit
PB: predicated region body
PF: predicated region fallthrough
CT: control target
= control target key end

     0   :  { %s1176_s0 = inlined_call_operand.vmem [shape: bf16[512,128], index: 0, kind: input, shape index: {}]   ;;  %s1177_s1 = inlined_call_operand.vmem [shape: f32[1,128], index: 1, kind: input, shape index: {}]   ;;  %s1178_s2 = inlined_call_operand.vmem [shape: f32[1,128], index: 2, kind: input, shape index: {}]   ;;  %s1179_s3 = inlined_call_operand.vmem [shape: bf16[512,128], index: 3, kind: output, shape index: {}]  }
   0x1   :  { %v475_v0 = vld [vmem:[%s1176_s0] sm:$0xff]   ;;  %v762_v5 = vld [vmem:[%s1176_s0 + $0x8] sm:$0xff]   ;;  %v763_v8 = vld [vmem:[%s1176_s0 + $0x10] sm:$0xff]  }
   0x2   :  { %v852_v1 = vld [vmem:[%s1177_s1] ss:$0 sm:$0xff]  ;;  %v476_v2 = vunpack.c.l.bf16 %v475_v0  ;;  %v477_v3 = vunpack.c.h.bf16 %v475_v0  ;;  %v480_v6 = vunpack.c.l.bf16 %v762_v5  ;;  %v481_v7 = vunpack.c.h.bf16 %v762_v5  ;;  %v764_v9 = vld [vmem:[%s1176_s0 + $0x18] sm:$0xff]   ;;  %v766_v35 = vld [vmem:[%s1176_s0 + $0x28] sm:$0xff]  }
   0x3   :  { %v857_v4 = vld [vmem:[%s1178_s2] ss:$0 sm:$0xff]  ;;  %v484_v12 = vunpack.c.l.bf16 %v763_v8  ;;  %v485_v13 = vunpack.c.h.bf16 %v763_v8  ;;  %v488_v16 = vunpack.c.l.bf16 %v764_v9  ;;  %v489_v17 = vunpack.c.h.bf16 %v764_v9  ;;  %v767_v40 = vld [vmem:[%s1176_s0 + $0x30] sm:$0xff]   ;;  %v768_v45 = vld [vmem:[%s1176_s0 + $0x38] sm:$0xff]  }
   0x4   :  { %v146_v10 = vmul.f32 %v852_v1, %v476_v2  ;;  %v147_v11 = vmul.f32 %v852_v1, %v477_v3  ;;  %v148_v14 = vmul.f32 %v852_v1, %v480_v6  ;;  %v149_v15 = vmul.f32 %v852_v1, %v481_v7  ;;  %v765_v26 = vld [vmem:[%s1176_s0 + $0x20] sm:$0xff]  }
   0x5   :  { %v150_v20 = vmul.f32 %v852_v1, %v484_v12  ;;  %v151_v21 = vmul.f32 %v852_v1, %v485_v13  ;;  %v152_v24 = vmul.f32 %v852_v1, %v488_v16  ;;  %v153_v25 = vmul.f32 %v852_v1, %v489_v17  ;;  %v769_v62 = vld [vmem:[%s1176_s0 + $0x40] sm:$0xff]   ;;  %v770_v13 = vld [vmem:[%s1176_s0 + $0x48] sm:$0xff]  }
   0x6   :  { %v214_v18 = vadd.f32 %v857_v4, %v146_v10  ;;  %v215_v19 = vadd.f32 %v857_v4, %v147_v11  ;;  %v216_v22 = vadd.f32 %v857_v4, %v148_v14  ;;  %v217_v23 = vadd.f32 %v857_v4, %v149_v15 }
   0x7   :  { %v218_v29 = vadd.f32 %v857_v4, %v150_v20  ;;  %v219_v30 = vadd.f32 %v857_v4, %v151_v21  ;;  %v220_v33 = vadd.f32 %v857_v4, %v152_v24  ;;  %v221_v34 = vadd.f32 %v857_v4, %v153_v25 }
   0x8   :  { %v278_v27 = vmax.f32 %v214_v18, 0.0  ;;  %v279_v28 = vmax.f32 %v215_v19, 0.0  ;;  %v280_v31 = vmax.f32 %v216_v22, 0.0  ;;  %v281_v32 = vmax.f32 %v217_v23, 0.0  ;;  %v771_v18 = vld [vmem:[%s1176_s0 + $0x50] sm:$0xff]   ;;  %v772_v23 = vld [vmem:[%s1176_s0 + $0x58] sm:$0xff]  }
   0x9   :  { %v282_v37 = vmax.f32 %v218_v29, 0.0  ;;  %v283_v38 = vmax.f32 %v219_v30, 0.0  ;;  %v492_v39 = vunpack.c.l.bf16 %v765_v26  ;;  %v284_v42 = vmax.f32 %v220_v33, 0.0 }
   0xa   :  { %v605_v36 = vpack.c.bf16 %v279_v28, %v278_v27  ;;  %v610_v41 = vpack.c.bf16 %v281_v32, %v280_v31  ;;  %v285_v43 = vmax.f32 %v221_v34, 0.0  ;;  %v493_v44 = vunpack.c.h.bf16 %v765_v26 }
   0xb   :  { %v615_v46 = vpack.c.bf16 %v283_v38, %v282_v37  ;;  %v154_v47 = vmul.f32 %v852_v1, %v492_v39  ;;  %v496_v48 = vunpack.c.l.bf16 %v766_v35  ;;  %v497_v49 = vunpack.c.h.bf16 %v766_v35 }
   0xc   :  { %606 = vst [vmem:[%s1179_s3] sm:$0xff] %v605_v36   ;;  %v620_v50 = vpack.c.bf16 %v285_v43, %v284_v42  ;;  %v155_v51 = vmul.f32 %v852_v1, %v493_v44  ;;  %v500_v52 = vunpack.c.l.bf16 %v767_v40  ;;  %v501_v53 = vunpack.c.h.bf16 %v767_v40  ;;  %v773_v36 = vld [vmem:[%s1176_s0 + $0x60] sm:$0xff]  }
   0xd   :  { %793 = vst [vmem:[%s1179_s3 + $0x8] sm:$0xff] %v610_v41   ;;  %v222_v54 = vadd.f32 %v857_v4, %v154_v47  ;;  %v156_v55 = vmul.f32 %v852_v1, %v496_v48  ;;  %v157_v56 = vmul.f32 %v852_v1, %v497_v49  ;;  %v504_v57 = vunpack.c.l.bf16 %v768_v45 }
   0xe   :  { %794 = vst [vmem:[%s1179_s3 + $0x10] sm:$0xff] %v615_v46   ;;  %v223_v58 = vadd.f32 %v857_v4, %v155_v51  ;;  %v158_v59 = vmul.f32 %v852_v1, %v500_v52  ;;  %v159_v60 = vmul.f32 %v852_v1, %v501_v53  ;;  %v505_v61 = vunpack.c.h.bf16 %v768_v45  ;;  %v774_v53 = vld [vmem:[%s1176_s0 + $0x68] sm:$0xff]  }
   0xf   :  { %795 = vst [vmem:[%s1179_s3 + $0x18] sm:$0xff] %v620_v50   ;;  %v286_v63 = vmax.f32 %v222_v54, 0.0  ;;  %v224_v0 = vadd.f32 %v857_v4, %v156_v55  ;;  %v225_v2 = vadd.f32 %v857_v4, %v157_v56  ;;  %v160_v3 = vmul.f32 %v852_v1, %v504_v57 }
  0x10   :  { %v287_v5 = vmax.f32 %v223_v58, 0.0  ;;  %v226_v6 = vadd.f32 %v857_v4, %v158_v59  ;;  %v227_v7 = vadd.f32 %v857_v4, %v159_v60  ;;  %v161_v8 = vmul.f32 %v852_v1, %v505_v61  ;;  %v775_v58 = vld [vmem:[%s1176_s0 + $0x70] sm:$0xff]  }
  0x11   :  { %v288_v9 = vmax.f32 %v224_v0, 0.0  ;;  %v289_v10 = vmax.f32 %v225_v2, 0.0  ;;  %v228_v11 = vadd.f32 %v857_v4, %v160_v3  ;;  %v508_v12 = vunpack.c.l.bf16 %v769_v62 }
  0x12   :  { %v625_v14 = vpack.c.bf16 %v287_v5, %v286_v63  ;;  %v290_v15 = vmax.f32 %v226_v6, 0.0  ;;  %v291_v16 = vmax.f32 %v227_v7, 0.0  ;;  %v229_v17 = vadd.f32 %v857_v4, %v161_v8  ;;  %v776_v63 = vld [vmem:[%s1176_s0 + $0x78] sm:$0xff]  }
  0x13   :  { %v630_v19 = vpack.c.bf16 %v289_v10, %v288_v9  ;;  %v292_v20 = vmax.f32 %v228_v11, 0.0  ;;  %v509_v21 = vunpack.c.h.bf16 %v769_v62  ;;  %v162_v22 = vmul.f32 %v852_v1, %v508_v12 }
  0x14   :  { %796 = vst [vmem:[%s1179_s3 + $0x20] sm:$0xff] %v625_v14   ;;  %v635_v24 = vpack.c.bf16 %v291_v16, %v290_v15  ;;  %v293_v25 = vmax.f32 %v229_v17, 0.0  ;;  %v512_v26 = vunpack.c.l.bf16 %v770_v13  ;;  %v513_v27 = vunpack.c.h.bf16 %v770_v13  ;;  %v777_v14 = vld [vmem:[%s1176_s0 + $0x80] sm:$0xff]  }
  0x15   :  { %797 = vst [vmem:[%s1179_s3 + $0x28] sm:$0xff] %v630_v19   ;;  %v163_v28 = vmul.f32 %v852_v1, %v509_v21  ;;  %v230_v29 = vadd.f32 %v857_v4, %v162_v22  ;;  %v516_v30 = vunpack.c.l.bf16 %v771_v18  ;;  %v517_v31 = vunpack.c.h.bf16 %v771_v18 }
  0x16   :  { %798 = vst [vmem:[%s1179_s3 + $0x30] sm:$0xff] %v635_v24   ;;  %v640_v32 = vpack.c.bf16 %v293_v25, %v292_v20  ;;  %v164_v33 = vmul.f32 %v852_v1, %v512_v26  ;;  %v165_v34 = vmul.f32 %v852_v1, %v513_v27  ;;  %v520_v35 = vunpack.c.l.bf16 %v772_v23  ;;  %v778_v27 = vld [vmem:[%s1176_s0 + $0x88] sm:$0xff]  }
  0x17   :  { %v231_v37 = vadd.f32 %v857_v4, %v163_v28  ;;  %v294_v38 = vmax.f32 %v230_v29, 0.0  ;;  %v166_v39 = vmul.f32 %v852_v1, %v516_v30  ;;  %v167_v40 = vmul.f32 %v852_v1, %v517_v31 }
  0x18   :  { %799 = vst [vmem:[%s1179_s3 + $0x38] sm:$0xff] %v640_v32   ;;  %v232_v41 = vadd.f32 %v857_v4, %v164_v33  ;;  %v233_v42 = vadd.f32 %v857_v4, %v165_v34  ;;  %v521_v43 = vunpack.c.h.bf16 %v772_v23  ;;  %v168_v44 = vmul.f32 %v852_v1, %v520_v35 }
  0x19   :  { %v295_v45 = vmax.f32 %v231_v37, 0.0  ;;  %v234_v46 = vadd.f32 %v857_v4, %v166_v39  ;;  %v235_v47 = vadd.f32 %v857_v4, %v167_v40  ;;  %v524_v48 = vunpack.c.l.bf16 %v773_v36 }
  0x1a   :  { %v296_v49 = vmax.f32 %v232_v41, 0.0  ;;  %v297_v50 = vmax.f32 %v233_v42, 0.0  ;;  %v169_v51 = vmul.f32 %v852_v1, %v521_v43  ;;  %v236_v52 = vadd.f32 %v857_v4, %v168_v44  ;;  %v780_v41 = vld [vmem:[%s1176_s0 + $0x98] sm:$0xff]  }
  0x1b   :  { %v645_v54 = vpack.c.bf16 %v295_v45, %v294_v38  ;;  %v298_v55 = vmax.f32 %v234_v46, 0.0  ;;  %v299_v56 = vmax.f32 %v235_v47, 0.0  ;;  %v525_v57 = vunpack.c.h.bf16 %v773_v36  ;;  %v779_v36 = vld [vmem:[%s1176_s0 + $0x90] sm:$0xff]  }
  0x1c   :  { %v650_v59 = vpack.c.bf16 %v297_v50, %v296_v49  ;;  %v237_v60 = vadd.f32 %v857_v4, %v169_v51  ;;  %v300_v61 = vmax.f32 %v236_v52, 0.0  ;;  %v170_v62 = vmul.f32 %v852_v1, %v524_v48 }
  0x1d   :  { %800 = vst [vmem:[%s1179_s3 + $0x40] sm:$0xff] %v645_v54   ;;  %v655_v0 = vpack.c.bf16 %v299_v56, %v298_v55  ;;  %v171_v2 = vmul.f32 %v852_v1, %v525_v57  ;;  %v528_v3 = vunpack.c.l.bf16 %v774_v53  ;;  %v529_v5 = vunpack.c.h.bf16 %v774_v53  ;;  %v781_v54 = vld [vmem:[%s1176_s0 + $0xa0] sm:$0xff]  }
  0x1e   :  { %801 = vst [vmem:[%s1179_s3 + $0x48] sm:$0xff] %v650_v59   ;;  %v301_v6 = vmax.f32 %v237_v60, 0.0  ;;  %v238_v7 = vadd.f32 %v857_v4, %v170_v62  ;;  %v532_v8 = vunpack.c.l.bf16 %v775_v58  ;;  %v533_v9 = vunpack.c.h.bf16 %v775_v58 }
  0x1f   :  { %802 = vst [vmem:[%s1179_s3 + $0x50] sm:$0xff] %v655_v0   ;;  %v239_v10 = vadd.f32 %v857_v4, %v171_v2  ;;  %v172_v11 = vmul.f32 %v852_v1, %v528_v3  ;;  %v173_v12 = vmul.f32 %v852_v1, %v529_v5  ;;  %v536_v13 = vunpack.c.l.bf16 %v776_v63  ;;  %v782_v5 = vld [vmem:[%s1176_s0 + $0xa8] sm:$0xff]  }
  0x20   :  { %v660_v15 = vpack.c.bf16 %v301_v6, %v300_v61  ;;  %v302_v16 = vmax.f32 %v238_v7, 0.0  ;;  %v174_v17 = vmul.f32 %v852_v1, %v532_v8  ;;  %v175_v18 = vmul.f32 %v852_v1, %v533_v9 }
  0x21   :  { %v303_v19 = vmax.f32 %v239_v10, 0.0  ;;  %v240_v20 = vadd.f32 %v857_v4, %v172_v11  ;;  %v241_v21 = vadd.f32 %v857_v4, %v173_v12  ;;  %v537_v22 = vunpack.c.h.bf16 %v776_v63 }
  0x22   :  { %803 = vst [vmem:[%s1179_s3 + $0x58] sm:$0xff] %v660_v15   ;;  %v242_v23 = vadd.f32 %v857_v4, %v174_v17  ;;  %v243_v24 = vadd.f32 %v857_v4, %v175_v18  ;;  %v176_v25 = vmul.f32 %v852_v1, %v536_v13  ;;  %v540_v26 = vunpack.c.l.bf16 %v777_v14 }
  0x23   :  { %v665_v28 = vpack.c.bf16 %v303_v19, %v302_v16  ;;  %v304_v29 = vmax.f32 %v240_v20, 0.0  ;;  %v305_v30 = vmax.f32 %v241_v21, 0.0  ;;  %v177_v31 = vmul.f32 %v852_v1, %v537_v22 }
  0x24   :  { %v306_v32 = vmax.f32 %v242_v23, 0.0  ;;  %v307_v33 = vmax.f32 %v243_v24, 0.0  ;;  %v244_v34 = vadd.f32 %v857_v4, %v176_v25  ;;  %v541_v35 = vunpack.c.h.bf16 %v777_v14  ;;  %v783_v14 = vld [vmem:[%s1176_s0 + $0xb0] sm:$0xff]   ;;  %v784_v23 = vld [vmem:[%s1176_s0 + $0xb8] sm:$0xff]  }
  0x25   :  { %804 = vst [vmem:[%s1179_s3 + $0x60] sm:$0xff] %v665_v28   ;;  %v670_v37 = vpack.c.bf16 %v305_v30, %v304_v29  ;;  %v245_v38 = vadd.f32 %v857_v4, %v177_v31  ;;  %v178_v39 = vmul.f32 %v852_v1, %v540_v26  ;;  %v544_v40 = vunpack.c.l.bf16 %v778_v27 }
  0x26   :  { %v675_v42 = vpack.c.bf16 %v307_v33, %v306_v32  ;;  %v308_v43 = vmax.f32 %v244_v34, 0.0  ;;  %v179_v44 = vmul.f32 %v852_v1, %v541_v35  ;;  %v545_v45 = vunpack.c.h.bf16 %v778_v27  ;;  %v785_v32 = vld [vmem:[%s1176_s0 + $0xc0] sm:$0xff]  }
  0x27   :  { %805 = vst [vmem:[%s1179_s3 + $0x68] sm:$0xff] %v670_v37   ;;  %v309_v46 = vmax.f32 %v245_v38, 0.0  ;;  %v246_v47 = vadd.f32 %v857_v4, %v178_v39  ;;  %v180_v48 = vmul.f32 %v852_v1, %v544_v40  ;;  %v548_v49 = vunpack.c.l.bf16 %v779_v36 }
  0x28   :  { %806 = vst [vmem:[%s1179_s3 + $0x70] sm:$0xff] %v675_v42   ;;  %v247_v50 = vadd.f32 %v857_v4, %v179_v44  ;;  %v181_v51 = vmul.f32 %v852_v1, %v545_v45  ;;  %v549_v52 = vunpack.c.h.bf16 %v779_v36  ;;  %v552_v53 = vunpack.c.l.bf16 %v780_v41  ;;  %v786_v45 = vld [vmem:[%s1176_s0 + $0xc8] sm:$0xff]  }
  0x29   :  { %v680_v55 = vpack.c.bf16 %v309_v46, %v308_v43  ;;  %v310_v56 = vmax.f32 %v246_v47, 0.0  ;;  %v248_v57 = vadd.f32 %v857_v4, %v180_v48  ;;  %v182_v58 = vmul.f32 %v852_v1, %v548_v49 }
  0x2a   :  { %v311_v59 = vmax.f32 %v247_v50, 0.0  ;;  %v249_v60 = vadd.f32 %v857_v4, %v181_v51  ;;  %v183_v61 = vmul.f32 %v852_v1, %v549_v52  ;;  %v553_v62 = vunpack.c.h.bf16 %v780_v41 }
  0x2b   :  { %807 = vst [vmem:[%s1179_s3 + $0x78] sm:$0xff] %v680_v55   ;;  %v312_v63 = vmax.f32 %v248_v57, 0.0  ;;  %v250_v0 = vadd.f32 %v857_v4, %v182_v58  ;;  %v184_v2 = vmul.f32 %v852_v1, %v552_v53  ;;  %v556_v3 = vunpack.c.l.bf16 %v781_v54 }
  0x2c   :  { %v685_v6 = vpack.c.bf16 %v311_v59, %v310_v56  ;;  %v313_v7 = vmax.f32 %v249_v60, 0.0  ;;  %v251_v8 = vadd.f32 %v857_v4, %v183_v61  ;;  %v185_v9 = vmul.f32 %v852_v1, %v553_v62 }
  0x2d   :  { %v314_v10 = vmax.f32 %v250_v0, 0.0  ;;  %v252_v11 = vadd.f32 %v857_v4, %v184_v2  ;;  %v557_v12 = vunpack.c.h.bf16 %v781_v54  ;;  %v186_v13 = vmul.f32 %v852_v1, %v556_v3  ;;  %v787_v54 = vld [vmem:[%s1176_s0 + $0xd0] sm:$0xff]  }
  0x2e   :  { %808 = vst [vmem:[%s1179_s3 + $0x80] sm:$0xff] %v685_v6   ;;  %v690_v15 = vpack.c.bf16 %v313_v7, %v312_v63  ;;  %v315_v16 = vmax.f32 %v251_v8, 0.0  ;;  %v253_v17 = vadd.f32 %v857_v4, %v185_v9  ;;  %v560_v18 = vunpack.c.l.bf16 %v782_v5  ;;  %v788_v63 = vld [vmem:[%s1176_s0 + $0xd8] sm:$0xff]  }
  0x2f   :  { %v316_v19 = vmax.f32 %v252_v11, 0.0  ;;  %v187_v20 = vmul.f32 %v852_v1, %v557_v12  ;;  %v254_v21 = vadd.f32 %v857_v4, %v186_v13  ;;  %v561_v22 = vunpack.c.h.bf16 %v782_v5 }
  0x30   :  { %809 = vst [vmem:[%s1179_s3 + $0x88] sm:$0xff] %v690_v15   ;;  %v695_v24 = vpack.c.bf16 %v315_v16, %v314_v10  ;;  %v317_v25 = vmax.f32 %v253_v17, 0.0  ;;  %v188_v26 = vmul.f32 %v852_v1, %v560_v18  ;;  %v564_v27 = vunpack.c.l.bf16 %v783_v14  ;;  %v789_v10 = vld [vmem:[%s1176_s0 + $0xe0] sm:$0xff]  }
  0x31   :  { %v255_v28 = vadd.f32 %v857_v4, %v187_v20  ;;  %v318_v29 = vmax.f32 %v254_v21, 0.0  ;;  %v189_v30 = vmul.f32 %v852_v1, %v561_v22  ;;  %v565_v31 = vunpack.c.h.bf16 %v783_v14 }
  0x32   :  { %810 = vst [vmem:[%s1179_s3 + $0x90] sm:$0xff] %v695_v24   ;;  %v700_v33 = vpack.c.bf16 %v317_v25, %v316_v19  ;;  %v256_v34 = vadd.f32 %v857_v4, %v188_v26  ;;  %v190_v35 = vmul.f32 %v852_v1, %v564_v27  ;;  %v568_v36 = vunpack.c.l.bf16 %v784_v23 }
  0x33   :  { %v319_v37 = vmax.f32 %v255_v28, 0.0  ;;  %v257_v38 = vadd.f32 %v857_v4, %v189_v30  ;;  %v191_v39 = vmul.f32 %v852_v1, %v565_v31  ;;  %v569_v40 = vunpack.c.h.bf16 %v784_v23  ;;  %v790_v23 = vld [vmem:[%s1176_s0 + $0xe8] sm:$0xff]  }
  0x34   :  { %811 = vst [vmem:[%s1179_s3 + $0x98] sm:$0xff] %v700_v33   ;;  %v320_v41 = vmax.f32 %v256_v34, 0.0  ;;  %v258_v42 = vadd.f32 %v857_v4, %v190_v35  ;;  %v192_v43 = vmul.f32 %v852_v1, %v568_v36  ;;  %v572_v44 = vunpack.c.l.bf16 %v785_v32 }
  0x35   :  { %v705_v46 = vpack.c.bf16 %v319_v37, %v318_v29  ;;  %v321_v47 = vmax.f32 %v257_v38, 0.0  ;;  %v259_v48 = vadd.f32 %v857_v4, %v191_v39  ;;  %v193_v49 = vmul.f32 %v852_v1, %v569_v40 }
  0x36   :  { %v322_v50 = vmax.f32 %v258_v42, 0.0  ;;  %v260_v51 = vadd.f32 %v857_v4, %v192_v43  ;;  %v573_v52 = vunpack.c.h.bf16 %v785_v32  ;;  %v194_v53 = vmul.f32 %v852_v1, %v572_v44  ;;  %v791_v32 = vld [vmem:[%s1176_s0 + $0xf0] sm:$0xff]  }
  0x37   :  { %812 = vst [vmem:[%s1179_s3 + $0xa0] sm:$0xff] %v705_v46   ;;  %v710_v55 = vpack.c.bf16 %v321_v47, %v320_v41  ;;  %v323_v56 = vmax.f32 %v259_v48, 0.0  ;;  %v261_v57 = vadd.f32 %v857_v4, %v193_v49  ;;  %v576_v58 = vunpack.c.l.bf16 %v786_v45  ;;  %v792_v41 = vld [vmem:[%s1176_s0 + $0xf8] sm:$0xff]  }
  0x38   :  { %v324_v59 = vmax.f32 %v260_v51, 0.0  ;;  %v195_v60 = vmul.f32 %v852_v1, %v573_v52  ;;  %v262_v61 = vadd.f32 %v857_v4, %v194_v53  ;;  %v577_v62 = vunpack.c.h.bf16 %v786_v45 }
  0x39   :  { %813 = vst [vmem:[%s1179_s3 + $0xa8] sm:$0xff] %v710_v55   ;;  %v715_v0 = vpack.c.bf16 %v323_v56, %v322_v50  ;;  %v325_v2 = vmax.f32 %v261_v57, 0.0  ;;  %v196_v3 = vmul.f32 %v852_v1, %v576_v58  ;;  %v580_v5 = vunpack.c.l.bf16 %v787_v54 }
  0x3a   :  { %v263_v6 = vadd.f32 %v857_v4, %v195_v60  ;;  %v326_v7 = vmax.f32 %v262_v61, 0.0  ;;  %v197_v8 = vmul.f32 %v852_v1, %v577_v62  ;;  %v581_v9 = vunpack.c.h.bf16 %v787_v54 }
  0x3b   :  { %814 = vst [vmem:[%s1179_s3 + $0xb0] sm:$0xff] %v715_v0   ;;  %v720_v11 = vpack.c.bf16 %v325_v2, %v324_v59  ;;  %v264_v12 = vadd.f32 %v857_v4, %v196_v3  ;;  %v198_v13 = vmul.f32 %v852_v1, %v580_v5  ;;  %v584_v14 = vunpack.c.l.bf16 %v788_v63 }
  0x3c   :  { %v327_v15 = vmax.f32 %v263_v6, 0.0  ;;  %v265_v16 = vadd.f32 %v857_v4, %v197_v8  ;;  %v199_v17 = vmul.f32 %v852_v1, %v581_v9  ;;  %v585_v18 = vunpack.c.h.bf16 %v788_v63 }
  0x3d   :  { %815 = vst [vmem:[%s1179_s3 + $0xb8] sm:$0xff] %v720_v11   ;;  %v328_v19 = vmax.f32 %v264_v12, 0.0  ;;  %v266_v20 = vadd.f32 %v857_v4, %v198_v13  ;;  %v200_v21 = vmul.f32 %v852_v1, %v584_v14  ;;  %v588_v22 = vunpack.c.l.bf16 %v789_v10 }
  0x3e   :  { %v725_v24 = vpack.c.bf16 %v327_v15, %v326_v7  ;;  %v329_v25 = vmax.f32 %v265_v16, 0.0  ;;  %v267_v26 = vadd.f32 %v857_v4, %v199_v17  ;;  %v201_v27 = vmul.f32 %v852_v1, %v585_v18 }
  0x3f   :  { %v330_v28 = vmax.f32 %v266_v20, 0.0  ;;  %v268_v29 = vadd.f32 %v857_v4, %v200_v21  ;;  %v589_v30 = vunpack.c.h.bf16 %v789_v10  ;;  %v202_v31 = vmul.f32 %v852_v1, %v588_v22 }
  0x40   :  { %816 = vst [vmem:[%s1179_s3 + $0xc0] sm:$0xff] %v725_v24   ;;  %v730_v33 = vpack.c.bf16 %v329_v25, %v328_v19  ;;  %v331_v34 = vmax.f32 %v267_v26, 0.0  ;;  %v269_v35 = vadd.f32 %v857_v4, %v201_v27  ;;  %v592_v36 = vunpack.c.l.bf16 %v790_v23 }
  0x41   :  { %v332_v37 = vmax.f32 %v268_v29, 0.0  ;;  %v203_v38 = vmul.f32 %v852_v1, %v589_v30  ;;  %v270_v39 = vadd.f32 %v857_v4, %v202_v31  ;;  %v593_v40 = vunpack.c.h.bf16 %v790_v23 }
  0x42   :  { %817 = vst [vmem:[%s1179_s3 + $0xc8] sm:$0xff] %v730_v33   ;;  %v735_v42 = vpack.c.bf16 %v331_v34, %v330_v28  ;;  %v333_v43 = vmax.f32 %v269_v35, 0.0  ;;  %v204_v44 = vmul.f32 %v852_v1, %v592_v36  ;;  %v596_v45 = vunpack.c.l.bf16 %v791_v32 }
  0x43   :  { %v271_v46 = vadd.f32 %v857_v4, %v203_v38  ;;  %v334_v47 = vmax.f32 %v270_v39, 0.0  ;;  %v205_v48 = vmul.f32 %v852_v1, %v593_v40  ;;  %v597_v49 = vunpack.c.h.bf16 %v791_v32 }
  0x44   :  { %818 = vst [vmem:[%s1179_s3 + $0xd0] sm:$0xff] %v735_v42   ;;  %v740_v50 = vpack.c.bf16 %v333_v43, %v332_v37  ;;  %v272_v51 = vadd.f32 %v857_v4, %v204_v44  ;;  %v206_v52 = vmul.f32 %v852_v1, %v596_v45  ;;  %v600_v53 = vunpack.c.l.bf16 %v792_v41 }
  0x45   :  { %v335_v54 = vmax.f32 %v271_v46, 0.0  ;;  %v273_v55 = vadd.f32 %v857_v4, %v205_v48  ;;  %v207_v56 = vmul.f32 %v852_v1, %v597_v49  ;;  %v601_v57 = vunpack.c.h.bf16 %v792_v41 }
  0x46   :  { %819 = vst [vmem:[%s1179_s3 + $0xd8] sm:$0xff] %v740_v50   ;;  %v336_v58 = vmax.f32 %v272_v51, 0.0  ;;  %v274_v59 = vadd.f32 %v857_v4, %v206_v52  ;;  %v208_v60 = vmul.f32 %v852_v1, %v600_v53 }
  0x47   :  { %v745_v61 = vpack.c.bf16 %v335_v54, %v334_v47  ;;  %v337_v62 = vmax.f32 %v273_v55, 0.0  ;;  %v275_v63 = vadd.f32 %v857_v4, %v207_v56  ;;  %v209_v0 = vmul.f32 %v852_v1, %v601_v57 }
  0x48   :  { %v338_v2 = vmax.f32 %v274_v59, 0.0  ;;  %v276_v3 = vadd.f32 %v857_v4, %v208_v60 }
  0x49   :  { %820 = vst [vmem:[%s1179_s3 + $0xe0] sm:$0xff] %v745_v61   ;;  %v750_v5 = vpack.c.bf16 %v337_v62, %v336_v58  ;;  %v339_v6 = vmax.f32 %v275_v63, 0.0  ;;  %v277_v7 = vadd.f32 %v857_v4, %v209_v0 }
  0x4a   :  { %v340_v8 = vmax.f32 %v276_v3, 0.0 }
  0x4b   :  { %821 = vst [vmem:[%s1179_s3 + $0xe8] sm:$0xff] %v750_v5   ;;  %v755_v9 = vpack.c.bf16 %v339_v6, %v338_v2  ;;  %v341_v10 = vmax.f32 %v277_v7, 0.0 }
  0x4d   :  { %822 = vst [vmem:[%s1179_s3 + $0xf0] sm:$0xff] %v755_v9   ;;  %v760_v1 = vpack.c.bf16 %v341_v10, %v340_v8 }
  0x4f   :  { %823 = vst [vmem:[%s1179_s3 + $0xf8] sm:$0xff] %v760_v1  }

// kernel: aspp_forward.14
= control target key start
LH: loop header
LB: loop body
LE: loop exit
PB: predicated region body
PF: predicated region fallthrough
CT: control target
= control target key end

     0   :  { %s937_s12 = smov 0   ;;  %s939_s13 = smov 0   ;;  %s1025_s0 = inlined_call_operand.vmem [shape: bf16[512,128], index: 0, kind: input, shape index: {}]   ;;  %s1026_s1 = inlined_call_operand.vmem [shape: bf16[128,128], index: 1, kind: input, shape index: {}]   ;;  %s1027_s2 = inlined_call_operand.vmem [shape: bf16[512,128], index: 2, kind: output, shape index: {0}]   ;;  %s1028_s3 = inlined_call_operand.vmem [shape: f32[32,128], index: 3, kind: output, shape index: {1}]  }
   0x1   :  { %s941_s14 = smov 0  }
   0x2 LB: > { %s26_s15 = sadd.s32 1, %s911_s13  ;;  %p710_p0 = scmp.ge.s32.totalorder %s915_s14, 1  ;;  %s915_s14 = sphi %s941_s14, %s14_s14   ;;  %s911_s13 = sphi %s939_s13, %s1030_s13   ;;  %s907_s12 = sphi %s937_s12, %s1029_s12  }
   0x3   : > { %p28_p1 = scmp.ge.s32.totalorder %s26_s15, 4  ;;  %p169_p2 = scmp.lt.s32.totalorder %s915_s14, 5 }
   0x5   : > { %s1032_s15 = smov (%p28_p1, %s26_s15), 0  ;;  %p170_p3 = pnand %p710_p0, %p169_p2 }
   0x6   : > { %s711_s24 = sshll.u32 (!%p170_p3), %s907_s12, 4  ;;  %p226_p5 = scmp.lt.s32.totalorder (!%p170_p3), %s907_s12, 3 }
   0x7   : > { %173 = sbr.rel (%p170_p3) target bundleno = 237 (0xed), region = 28  ;;  %p206_p4 = scmp.lt.s32.totalorder (!%p170_p3), %s711_s24, 63 }
   0xc   : > { %v797_v0 = vld [vmem:[%s1026_s1 + $0x38] sm:$0xff]  ;;  %v796_v1 = vld [vmem:[%s1026_s1 + $0x30] sm:$0xff]  ;;  %v795_v2 = vld [vmem:[%s1026_s1 + $0x28] sm:$0xff]  ;;  %s1034_s24 = smov (!%p206_p4, %s711_s24), 63  ;;  %s1036_s12 = smov (!%p226_p5, %s907_s12), 3 }
   0xd   : > { %394 = vmatpush.bf16.msra.mxu0 %v797_v0  ;;  %845 = vmatpush.bf16.msra.mxu1 %v797_v0  ;;  %v794_v3 = vld [vmem:[%s1026_s1 + $0x20] sm:$0xff]  ;;  %v793_v4 = vld [vmem:[%s1026_s1 + $0x18] sm:$0xff]  ;;  %v792_v5 = vld [vmem:[%s1026_s1 + $0x10] sm:$0xff]  ;;  %s712_s4 = sshll.u32 %s1034_s24, 2  ;;  %s715_s17 = sshll.u32 %s1036_s12, 3 }
   0xe   : > { %846 = vmatpush.bf16.msra.mxu2 %v797_v0  ;;  %847 = vmatpush.bf16.msra.mxu3 %v797_v0  ;;  %v791_v6 = vld [vmem:[%s1026_s1 + $0x8] sm:$0xff]  ;;  %v790_v7 = vld [vmem:[%s1026_s1] sm:$0xff]  ;;  %s212_s9 = scalar_lea.vmem %s1025_s0, %s712_s4  ;;  %s997_s16 = scalar_lea.vmem %s1027_s2, %s712_s4 }
   0xf   : > { %v782_v8 = vld [vmem:[%s212_s9] sm:$0xff]  ;;  %v784_v9 = vld [vmem:[%s212_s9 + $0x10] sm:$0xff]  ;;  %v783_v12 = vld [vmem:[%s212_s9 + $0x8] sm:$0xff]  ;;  %s229_s20 = scalar_lea.vmem %s1028_s3, %s715_s17 }
  0x10   : > { %v786_v10 = vld [vmem:[%s212_s9 + $0x20] sm:$0xff]  ;;  %v788_v11 = vld [vmem:[%s212_s9 + $0x30] sm:$0xff]  ;;  %v785_v13 = vld [vmem:[%s212_s9 + $0x18] sm:$0xff] }
  0x11   : > { %395 = vmatpush.bf16.msra.mxu0 %v796_v1  ;;  %848 = vmatpush.bf16.msra.mxu1 %v796_v1  ;;  %v787_v14 = vld [vmem:[%s212_s9 + $0x28] sm:$0xff]  ;;  %v789_v15 = vld [vmem:[%s212_s9 + $0x38] sm:$0xff] }
  0x12   : > { %849 = vmatpush.bf16.msra.mxu2 %v796_v1  ;;  %850 = vmatpush.bf16.msra.mxu3 %v796_v1 }
  0x15   : > { %396 = vmatpush.bf16.msra.mxu0 %v795_v2  ;;  %851 = vmatpush.bf16.msra.mxu1 %v795_v2 }
  0x16   : > { %852 = vmatpush.bf16.msra.mxu2 %v795_v2  ;;  %853 = vmatpush.bf16.msra.mxu3 %v795_v2 }
  0x19   : > { %397 = vmatpush.bf16.msra.mxu0 %v794_v3  ;;  %854 = vmatpush.bf16.msra.mxu1 %v794_v3 }
  0x1a   : > { %855 = vmatpush.bf16.msra.mxu2 %v794_v3  ;;  %856 = vmatpush.bf16.msra.mxu3 %v794_v3 }
  0x1d   : > { %398 = vmatpush.bf16.msra.mxu0 %v793_v4  ;;  %857 = vmatpush.bf16.msra.mxu1 %v793_v4 }
  0x1e   : > { %858 = vmatpush.bf16.msra.mxu2 %v793_v4  ;;  %859 = vmatpush.bf16.msra.mxu3 %v793_v4 }
  0x21   : > { %399 = vmatpush.bf16.msra.mxu0 %v792_v5  ;;  %860 = vmatpush.bf16.msra.mxu1 %v792_v5 }
  0x22   : > { %861 = vmatpush.bf16.msra.mxu2 %v792_v5  ;;  %862 = vmatpush.bf16.msra.mxu3 %v792_v5 }
  0x25   : > { %400 = vmatpush.bf16.msra.mxu0 %v791_v6  ;;  %863 = vmatpush.bf16.msra.mxu1 %v791_v6 }
  0x26   : > { %864 = vmatpush.bf16.msra.mxu2 %v791_v6  ;;  %865 = vmatpush.bf16.msra.mxu3 %v791_v6 }
  0x29   : > { %401 = vmatpush.bf16.msra.mxu0 %v790_v7  ;;  %866 = vmatpush.bf16.msra.mxu1 %v790_v7 }
  0x2a   : > { %867 = vmatpush.bf16.msra.mxu2 %v790_v7  ;;  %868 = vmatpush.bf16.msra.mxu3 %v790_v7 }
  0x2c   : > { %402 = vmatmul.bf16.vlgmr.msra.gmra.mxu0 %v782_v8  ;;  %412 = vmatmul.bf16.vlgmr.msra.gmra.mxu1 %v784_v9 }
  0x2d   : > { %422 = vmatmul.bf16.vlgmr.msra.gmra.mxu2 %v786_v10  ;;  %432 = vmatmul.bf16.vlgmr.msra.gmra.mxu3 %v788_v11 }
  0x3c   : > { %407 = vmatmul.bf16.gmra.mxu0 %v783_v12  ;;  %417 = vmatmul.bf16.gmra.mxu1 %v785_v13 }
  0x3d   : > { %427 = vmatmul.bf16.gmra.mxu2 %v787_v14  ;;  %437 = vmatmul.bf16.gmra.mxu3 %v789_v15 }
  0xa9   : > { %v403_v16 = vpop.f32.mrf.mxu0  ;;  %v413_v17 = vpop.f32.mrf.mxu1 }
  0xaa   : > { %v547_v31 = vmul.f32 %v403_v16, %v403_v16  ;;  %v551_v45 = vmul.f32 %v413_v17, %v413_v17 }
  0xb0   : > { %v423_v18 = vpop.f32.mrf.mxu2  ;;  %v990_v19 = vpop.f32.mrf.mxu3 }
  0xb1   : > { %v405_v20 = vpop.f32.mrf.mxu0  ;;  %v415_v21 = vpop.f32.mrf.mxu1  ;;  %v555_v61 = vmul.f32 %v423_v18, %v423_v18  ;;  %v559_v9 = vmul.f32 %v990_v19, %v990_v19 }
  0xb2   : > { %v801_v22 = vpack.c.bf16 %v405_v20, %v403_v16  ;;  %v811_v23 = vpack.c.bf16 %v415_v21, %v413_v17  ;;  %v548_v30 = vmul.f32 %v405_v20, %v405_v20  ;;  %v526_v33 = vadd.f32 %v405_v20, %v403_v16 }
  0xb3   : > { %v552_v48 = vmul.f32 %v415_v21, %v415_v21 }
  0xb4   : > { %802 = vst [vmem:[%s997_s16] sm:$0xff] %v801_v22   ;;  %v563_v34 = vadd.f32 %v548_v30, %v547_v31 }
  0xb5   : > { %839 = vst [vmem:[%s997_s16 + $0x10] sm:$0xff] %v811_v23  }
  0xb8   : > { %v425_v24 = vpop.f32.mrf.mxu2  ;;  %v435_v25 = vpop.f32.mrf.mxu3 }
  0xb9   : > { %v408_v26 = vpop.f32.mrf.mxu0  ;;  %v418_v27 = vpop.f32.mrf.mxu1  ;;  %v821_v28 = vpack.c.bf16 %v425_v24, %v423_v18  ;;  %v831_v29 = vpack.c.bf16 %v435_v25, %v990_v19  ;;  %v556_v0 = vmul.f32 %v425_v24, %v425_v24  ;;  %v560_v12 = vmul.f32 %v435_v25, %v435_v25 }
  0xba   : > { %v549_v32 = vmul.f32 %v408_v26, %v408_v26  ;;  %v527_v35 = vadd.f32 %v526_v33, %v408_v26  ;;  %v553_v51 = vmul.f32 %v418_v27, %v418_v27 }
  0xbb   : > { %841 = vst [vmem:[%s997_s16 + $0x20] sm:$0xff] %v821_v28  }
  0xbc   : > { %843 = vst [vmem:[%s997_s16 + $0x30] sm:$0xff] %v831_v29   ;;  %v564_v38 = vadd.f32 %v563_v34, %v549_v32 }
  0xc0   : > { %v428_v36 = vpop.f32.mrf.mxu2  ;;  %v438_v37 = vpop.f32.mrf.mxu3 }
  0xc1   : > { %v410_v39 = vpop.f32.mrf.mxu0  ;;  %v420_v40 = vpop.f32.mrf.mxu1  ;;  %v557_v4 = vmul.f32 %v428_v36, %v428_v36  ;;  %v561_v16 = vmul.f32 %v438_v37, %v438_v37 }
  0xc2   : > { %v806_v41 = vpack.c.bf16 %v410_v39, %v408_v26  ;;  %v528_v42 = vadd.f32 %v527_v35, %v410_v39  ;;  %v550_v43 = vmul.f32 %v410_v39, %v410_v39  ;;  %v816_v44 = vpack.c.bf16 %v420_v40, %v418_v27 }
  0xc3   : > { %v554_v59 = vmul.f32 %v420_v40, %v420_v40 }
  0xc4   : > { %838 = vst [vmem:[%s997_s16 + $0x8] sm:$0xff] %v806_v41   ;;  %v529_v46 = vadd.f32 %v528_v42, %v413_v17  ;;  %v565_v47 = vadd.f32 %v564_v38, %v550_v43 }
  0xc5   : > { %840 = vst [vmem:[%s997_s16 + $0x18] sm:$0xff] %v816_v44  }
  0xc6   : > { %v566_v49 = vadd.f32 %v565_v47, %v551_v45  ;;  %v530_v50 = vadd.f32 %v529_v46, %v415_v21 }
  0xc8   : > { %v531_v52 = vadd.f32 %v530_v50, %v418_v27  ;;  %v567_v53 = vadd.f32 %v566_v49, %v552_v48  ;;  %v430_v54 = vpop.f32.mrf.mxu2  ;;  %v440_v55 = vpop.f32.mrf.mxu3  ;;  %v584_v27 = vlaneseq }
  0xc9   : > { %v826_v56 = vpack.c.bf16 %v430_v54, %v428_v36  ;;  %v836_v57 = vpack.c.bf16 %v440_v55, %v438_v37  ;;  %v558_v8 = vmul.f32 %v430_v54, %v430_v54  ;;  %v562_v21 = vmul.f32 %v440_v55, %v440_v55 }
  0xca   : > { %v532_v58 = vadd.f32 %v531_v52, %v420_v40  ;;  %v568_v60 = vadd.f32 %v567_v53, %v553_v51  ;;  %v585_v31 = vshrl.u32 %v584_v27, 7 }
  0xcb   : > { %842 = vst [vmem:[%s997_s16 + $0x28] sm:$0xff] %v826_v56  }
  0xcc   : > { %v533_v62 = vadd.f32 %v532_v58, %v423_v18  ;;  %v569_v63 = vadd.f32 %v568_v60, %v554_v59  ;;  %844 = vst [vmem:[%s997_s16 + $0x38] sm:$0xff] %v836_v57   ;;  %vm587_vm0 = vcmp.eq.s32.totalorder %v585_v31, 1  ;;  %vm586_vm1 = vcmp.eq.s32.totalorder %v585_v31, 0 }
  0xce   : > { %v570_v1 = vadd.f32 %v569_v63, %v555_v61  ;;  %v534_v2 = vadd.f32 %v533_v62, %v425_v24 }
  0xd0   : > { %v535_v3 = vadd.f32 %v534_v2, %v428_v36  ;;  %v571_v5 = vadd.f32 %v570_v1, %v556_v0 }
  0xd2   : > { %v572_v6 = vadd.f32 %v571_v5, %v557_v4  ;;  %v536_v7 = vadd.f32 %v535_v3, %v430_v54 }
  0xd4   : > { %v537_v10 = vadd.f32 %v536_v7, %v990_v19  ;;  %v573_v11 = vadd.f32 %v572_v6, %v558_v8 }
  0xd6   : > { %v574_v13 = vadd.f32 %v573_v11, %v559_v9  ;;  %v538_v14 = vadd.f32 %v537_v10, %v435_v25 }
  0xd8   : > { %v539_v15 = vadd.f32 %v538_v14, %v438_v37  ;;  %v575_v17 = vadd.f32 %v574_v13, %v560_v12 }
  0xda   : > { %v576_v18 = vadd.f32 %v575_v17, %v561_v16  ;;  %v540_v20 = vadd.f32 %v539_v15, %v440_v55 }
  0xdc   : > { %v541_v22 = vrot.slane %v540_v20, 4  ;;  %v577_v23 = vadd.f32 %v576_v18, %v562_v21 }
  0xde   : > { %v542_v24 = vadd.f32 %v541_v22, %v540_v20  ;;  %v578_v26 = vrot.slane %v577_v23, 4 }
  0xe0   : > { %v543_v28 = vrot.slane %v542_v24, 2  ;;  %v579_v29 = vadd.f32 %v578_v26, %v577_v23 }
  0xe2   : > { %v544_v19 = vadd.f32 %v543_v28, %v542_v24  ;;  %v580_v30 = vrot.slane %v579_v29, 2 }
  0xe4   : > { %v581_v32 = vadd.f32 %v580_v30, %v579_v29  ;;  %v545_v25 = vrot.slane %v544_v19, 1 }
  0xe6   : > { %v582_v33 = vrot.slane %v581_v32, 1  ;;  %v546_v35 = vadd.f32 %v545_v25, %v544_v19 }
  0xe8   : > { %v583_v34 = vadd.f32 %v582_v33, %v581_v32 }
  0xea   : > { %v588_v36 = vsel %vm587_vm0, %v583_v34, 0.0 }
  0xeb   : > { %v589_v37 = vsel %vm586_vm1, %v546_v35, %v588_v36 }
  0xec   : > { %590 = vst [vmem:[%s229_s20] sm:$0xff] %v589_v37 }
  0xed PF: > { %s14_s14 = sadd.s32 1, %s915_s14   ;;  %s1029_s12 = smov %s911_s13 }
  0xee   : > { %p11_p6 = scmp.ge.s32.totalorder %s14_s14, 6   ;;  %s1030_s13 = smov %s1032_s15 }
  0xf0   :  { %13 = sbr.rel (!%p11_p6) target bundleno = 2 (0x2), region = 81 }

// kernel: aspp_forward.19
= control target key start
LH: loop header
LB: loop body
LE: loop exit
PB: predicated region body
PF: predicated region fallthrough
CT: control target
= control target key end

     0   :  { %s1017_s0 = inlined_call_operand.vmem [shape: bf16[512,128], index: 0, kind: input, shape index: {}]   ;;  %s1018_s1 = inlined_call_operand.vmem [shape: f32[1,128], index: 1, kind: input, shape index: {}]   ;;  %s1019_s2 = inlined_call_operand.vmem [shape: f32[1,128], index: 2, kind: input, shape index: {}]   ;;  %s1020_s3 = inlined_call_operand.vmem [shape: f32[512,128], index: 3, kind: output, shape index: {}]  }
   0x1   :  { %v411_v0 = vld [vmem:[%s1017_s0] sm:$0xff]   ;;  %v538_v5 = vld [vmem:[%s1017_s0 + $0x8] sm:$0xff]   ;;  %v539_v8 = vld [vmem:[%s1017_s0 + $0x10] sm:$0xff]  }
   0x2   :  { %v597_v1 = vld [vmem:[%s1018_s1] ss:$0 sm:$0xff]  ;;  %v412_v2 = vunpack.c.l.bf16 %v411_v0  ;;  %v413_v4 = vunpack.c.h.bf16 %v411_v0  ;;  %v416_v6 = vunpack.c.l.bf16 %v538_v5  ;;  %v417_v7 = vunpack.c.h.bf16 %v538_v5  ;;  %v540_v9 = vld [vmem:[%s1017_s0 + $0x18] sm:$0xff]   ;;  %v542_v31 = vld [vmem:[%s1017_s0 + $0x28] sm:$0xff]  }
   0x3   :  { %v602_v3 = vld [vmem:[%s1019_s2] ss:$0 sm:$0xff]  ;;  %v420_v12 = vunpack.c.l.bf16 %v539_v8  ;;  %v421_v13 = vunpack.c.h.bf16 %v539_v8  ;;  %v424_v16 = vunpack.c.l.bf16 %v540_v9  ;;  %v425_v17 = vunpack.c.h.bf16 %v540_v9  ;;  %v543_v36 = vld [vmem:[%s1017_s0 + $0x30] sm:$0xff]   ;;  %v544_v41 = vld [vmem:[%s1017_s0 + $0x38] sm:$0xff]  }
   0x4   :  { %v146_v10 = vmul.f32 %v597_v1, %v412_v2  ;;  %v147_v11 = vmul.f32 %v597_v1, %v413_v4  ;;  %v148_v14 = vmul.f32 %v597_v1, %v416_v6  ;;  %v149_v15 = vmul.f32 %v597_v1, %v417_v7  ;;  %v541_v26 = vld [vmem:[%s1017_s0 + $0x20] sm:$0xff]   ;;  %v546_v5 = vld [vmem:[%s1017_s0 + $0x48] sm:$0xff]  }
   0x5   :  { %v150_v20 = vmul.f32 %v597_v1, %v420_v12  ;;  %v151_v21 = vmul.f32 %v597_v1, %v421_v13  ;;  %v152_v24 = vmul.f32 %v597_v1, %v424_v16  ;;  %v153_v25 = vmul.f32 %v597_v1, %v425_v17  ;;  %v545_v62 = vld [vmem:[%s1017_s0 + $0x40] sm:$0xff]  }
   0x6   :  { %v214_v18 = vadd.f32 %v602_v3, %v146_v10  ;;  %v215_v19 = vadd.f32 %v602_v3, %v147_v11  ;;  %v216_v22 = vadd.f32 %v602_v3, %v148_v14  ;;  %v217_v23 = vadd.f32 %v602_v3, %v149_v15  ;;  %v547_v10 = vld [vmem:[%s1017_s0 + $0x50] sm:$0xff]   ;;  %v548_v15 = vld [vmem:[%s1017_s0 + $0x58] sm:$0xff]  }
   0x7   :  { %v218_v29 = vadd.f32 %v602_v3, %v150_v20  ;;  %v219_v30 = vadd.f32 %v602_v3, %v151_v21  ;;  %v220_v34 = vadd.f32 %v602_v3, %v152_v24  ;;  %v221_v35 = vadd.f32 %v602_v3, %v153_v25 }
   0x8   :  { %v278_v27 = vmax.f32 %v214_v18, 0.0  ;;  %v279_v28 = vmax.f32 %v215_v19, 0.0  ;;  %v280_v32 = vmax.f32 %v216_v22, 0.0  ;;  %v281_v33 = vmax.f32 %v217_v23, 0.0 }
   0x9   :  { %v282_v37 = vmax.f32 %v218_v29, 0.0  ;;  %v283_v38 = vmax.f32 %v219_v30, 0.0  ;;  %v428_v39 = vunpack.c.l.bf16 %v541_v26  ;;  %v429_v40 = vunpack.c.h.bf16 %v541_v26 }
   0xa   :  { %342 = vst [vmem:[%s1020_s3] sm:$0xff] %v278_v27  ;;  %v284_v42 = vmax.f32 %v220_v34, 0.0  ;;  %v285_v43 = vmax.f32 %v221_v35, 0.0  ;;  %v432_v44 = vunpack.c.l.bf16 %v542_v31  ;;  %v433_v45 = vunpack.c.h.bf16 %v542_v31 }
   0xb   :  { %343 = vst [vmem:[%s1020_s3 + $0x8] sm:$0xff] %v279_v28  ;;  %v154_v46 = vmul.f32 %v597_v1, %v428_v39  ;;  %v155_v47 = vmul.f32 %v597_v1, %v429_v40  ;;  %v436_v48 = vunpack.c.l.bf16 %v543_v36  ;;  %v437_v49 = vunpack.c.h.bf16 %v543_v36  ;;  %v549_v36 = vld [vmem:[%s1017_s0 + $0x60] sm:$0xff]  }
   0xc   :  { %344 = vst [vmem:[%s1020_s3 + $0x10] sm:$0xff] %v280_v32  ;;  %v156_v50 = vmul.f32 %v597_v1, %v432_v44  ;;  %v157_v51 = vmul.f32 %v597_v1, %v433_v45  ;;  %v440_v52 = vunpack.c.l.bf16 %v544_v41  ;;  %v441_v53 = vunpack.c.h.bf16 %v544_v41  ;;  %v550_v41 = vld [vmem:[%s1017_s0 + $0x68] sm:$0xff]  }
   0xd   :  { %345 = vst [vmem:[%s1020_s3 + $0x18] sm:$0xff] %v281_v33  ;;  %v222_v54 = vadd.f32 %v602_v3, %v154_v46  ;;  %v223_v55 = vadd.f32 %v602_v3, %v155_v47  ;;  %v158_v56 = vmul.f32 %v597_v1, %v436_v48  ;;  %v159_v57 = vmul.f32 %v597_v1, %v437_v49  ;;  %v551_v46 = vld [vmem:[%s1017_s0 + $0x70] sm:$0xff]  }
   0xe   :  { %346 = vst [vmem:[%s1020_s3 + $0x20] sm:$0xff] %v282_v37  ;;  %v224_v58 = vadd.f32 %v602_v3, %v156_v50  ;;  %v225_v59 = vadd.f32 %v602_v3, %v157_v51  ;;  %v160_v60 = vmul.f32 %v597_v1, %v440_v52  ;;  %v161_v61 = vmul.f32 %v597_v1, %v441_v53  ;;  %v552_v51 = vld [vmem:[%s1017_s0 + $0x78] sm:$0xff]  }
   0xf   :  { %347 = vst [vmem:[%s1020_s3 + $0x28] sm:$0xff] %v283_v38  ;;  %v286_v63 = vmax.f32 %v222_v54, 0.0  ;;  %v287_v0 = vmax.f32 %v223_v55, 0.0  ;;  %v226_v2 = vadd.f32 %v602_v3, %v158_v56  ;;  %v227_v4 = vadd.f32 %v602_v3, %v159_v57 }
  0x10   :  { %348 = vst [vmem:[%s1020_s3 + $0x30] sm:$0xff] %v284_v42  ;;  %v288_v6 = vmax.f32 %v224_v58, 0.0  ;;  %v289_v7 = vmax.f32 %v225_v59, 0.0  ;;  %v228_v8 = vadd.f32 %v602_v3, %v160_v60  ;;  %v229_v9 = vadd.f32 %v602_v3, %v161_v61 }
  0x11   :  { %349 = vst [vmem:[%s1020_s3 + $0x38] sm:$0xff] %v285_v43  ;;  %v290_v11 = vmax.f32 %v226_v2, 0.0  ;;  %v291_v12 = vmax.f32 %v227_v4, 0.0  ;;  %v444_v13 = vunpack.c.l.bf16 %v545_v62  ;;  %v445_v14 = vunpack.c.h.bf16 %v545_v62 }
  0x12   :  { %350 = vst [vmem:[%s1020_s3 + $0x40] sm:$0xff] %v286_v63  ;;  %v292_v16 = vmax.f32 %v228_v8, 0.0  ;;  %v293_v17 = vmax.f32 %v229_v9, 0.0  ;;  %v448_v18 = vunpack.c.l.bf16 %v546_v5  ;;  %v449_v19 = vunpack.c.h.bf16 %v546_v5 }
  0x13   :  { %351 = vst [vmem:[%s1020_s3 + $0x48] sm:$0xff] %v287_v0  ;;  %v162_v20 = vmul.f32 %v597_v1, %v444_v13  ;;  %v163_v21 = vmul.f32 %v597_v1, %v445_v14  ;;  %v452_v22 = vunpack.c.l.bf16 %v547_v10  ;;  %v453_v23 = vunpack.c.h.bf16 %v547_v10  ;;  %v553_v10 = vld [vmem:[%s1017_s0 + $0x80] sm:$0xff]  }
  0x14   :  { %352 = vst [vmem:[%s1020_s3 + $0x50] sm:$0xff] %v288_v6  ;;  %v164_v24 = vmul.f32 %v597_v1, %v448_v18  ;;  %v165_v25 = vmul.f32 %v597_v1, %v449_v19  ;;  %v456_v26 = vunpack.c.l.bf16 %v548_v15  ;;  %v457_v27 = vunpack.c.h.bf16 %v548_v15  ;;  %v554_v15 = vld [vmem:[%s1017_s0 + $0x88] sm:$0xff]  }
  0x15   :  { %353 = vst [vmem:[%s1020_s3 + $0x58] sm:$0xff] %v289_v7  ;;  %v230_v28 = vadd.f32 %v602_v3, %v162_v20  ;;  %v231_v29 = vadd.f32 %v602_v3, %v163_v21  ;;  %v166_v30 = vmul.f32 %v597_v1, %v452_v22  ;;  %v167_v31 = vmul.f32 %v597_v1, %v453_v23  ;;  %v555_v20 = vld [vmem:[%s1017_s0 + $0x90] sm:$0xff]  }
  0x16   :  { %354 = vst [vmem:[%s1020_s3 + $0x60] sm:$0xff] %v290_v11  ;;  %v232_v32 = vadd.f32 %v602_v3, %v164_v24  ;;  %v233_v33 = vadd.f32 %v602_v3, %v165_v25  ;;  %v168_v34 = vmul.f32 %v597_v1, %v456_v26  ;;  %v169_v35 = vmul.f32 %v597_v1, %v457_v27  ;;  %v556_v25 = vld [vmem:[%s1017_s0 + $0x98] sm:$0xff]  }
  0x17   :  { %355 = vst [vmem:[%s1020_s3 + $0x68] sm:$0xff] %v291_v12  ;;  %v294_v37 = vmax.f32 %v230_v28, 0.0  ;;  %v295_v38 = vmax.f32 %v231_v29, 0.0  ;;  %v234_v39 = vadd.f32 %v602_v3, %v166_v30  ;;  %v235_v40 = vadd.f32 %v602_v3, %v167_v31 }
  0x18   :  { %356 = vst [vmem:[%s1020_s3 + $0x70] sm:$0xff] %v292_v16  ;;  %v296_v42 = vmax.f32 %v232_v32, 0.0  ;;  %v297_v43 = vmax.f32 %v233_v33, 0.0  ;;  %v236_v44 = vadd.f32 %v602_v3, %v168_v34  ;;  %v237_v45 = vadd.f32 %v602_v3, %v169_v35 }
  0x19   :  { %357 = vst [vmem:[%s1020_s3 + $0x78] sm:$0xff] %v293_v17  ;;  %v298_v47 = vmax.f32 %v234_v39, 0.0  ;;  %v299_v48 = vmax.f32 %v235_v40, 0.0  ;;  %v460_v49 = vunpack.c.l.bf16 %v549_v36  ;;  %v461_v50 = vunpack.c.h.bf16 %v549_v36 }
  0x1a   :  { %358 = vst [vmem:[%s1020_s3 + $0x80] sm:$0xff] %v294_v37  ;;  %v300_v52 = vmax.f32 %v236_v44, 0.0  ;;  %v301_v53 = vmax.f32 %v237_v45, 0.0  ;;  %v464_v54 = vunpack.c.l.bf16 %v550_v41  ;;  %v465_v55 = vunpack.c.h.bf16 %v550_v41 }
  0x1b   :  { %359 = vst [vmem:[%s1020_s3 + $0x88] sm:$0xff] %v295_v38  ;;  %v170_v56 = vmul.f32 %v597_v1, %v460_v49  ;;  %v171_v57 = vmul.f32 %v597_v1, %v461_v50  ;;  %v468_v58 = vunpack.c.l.bf16 %v551_v46  ;;  %v469_v59 = vunpack.c.h.bf16 %v551_v46  ;;  %v557_v46 = vld [vmem:[%s1017_s0 + $0xa0] sm:$0xff]  }
  0x1c   :  { %360 = vst [vmem:[%s1020_s3 + $0x90] sm:$0xff] %v296_v42  ;;  %v172_v60 = vmul.f32 %v597_v1, %v464_v54  ;;  %v173_v61 = vmul.f32 %v597_v1, %v465_v55  ;;  %v472_v62 = vunpack.c.l.bf16 %v552_v51  ;;  %v473_v63 = vunpack.c.h.bf16 %v552_v51  ;;  %v558_v51 = vld [vmem:[%s1017_s0 + $0xa8] sm:$0xff]  }
  0x1d   :  { %361 = vst [vmem:[%s1020_s3 + $0x98] sm:$0xff] %v297_v43  ;;  %v238_v0 = vadd.f32 %v602_v3, %v170_v56  ;;  %v239_v2 = vadd.f32 %v602_v3, %v171_v57  ;;  %v174_v4 = vmul.f32 %v597_v1, %v468_v58  ;;  %v175_v5 = vmul.f32 %v597_v1, %v469_v59  ;;  %v559_v56 = vld [vmem:[%s1017_s0 + $0xb0] sm:$0xff]  }
  0x1e   :  { %362 = vst [vmem:[%s1020_s3 + $0xa0] sm:$0xff] %v298_v47  ;;  %v240_v6 = vadd.f32 %v602_v3, %v172_v60  ;;  %v241_v7 = vadd.f32 %v602_v3, %v173_v61  ;;  %v176_v8 = vmul.f32 %v597_v1, %v472_v62  ;;  %v177_v9 = vmul.f32 %v597_v1, %v473_v63  ;;  %v560_v61 = vld [vmem:[%s1017_s0 + $0xb8] sm:$0xff]  }
  0x1f   :  { %363 = vst [vmem:[%s1020_s3 + $0xa8] sm:$0xff] %v299_v48  ;;  %v302_v11 = vmax.f32 %v238_v0, 0.0  ;;  %v303_v12 = vmax.f32 %v239_v2, 0.0  ;;  %v242_v13 = vadd.f32 %v602_v3, %v174_v4  ;;  %v243_v14 = vadd.f32 %v602_v3, %v175_v5 }
  0x20   :  { %364 = vst [vmem:[%s1020_s3 + $0xb0] sm:$0xff] %v300_v52  ;;  %v304_v16 = vmax.f32 %v240_v6, 0.0  ;;  %v305_v17 = vmax.f32 %v241_v7, 0.0  ;;  %v244_v18 = vadd.f32 %v602_v3, %v176_v8  ;;  %v245_v19 = vadd.f32 %v602_v3, %v177_v9 }
  0x21   :  { %365 = vst [vmem:[%s1020_s3 + $0xb8] sm:$0xff] %v301_v53  ;;  %v306_v21 = vmax.f32 %v242_v13, 0.0  ;;  %v307_v22 = vmax.f32 %v243_v14, 0.0  ;;  %v476_v23 = vunpack.c.l.bf16 %v553_v10  ;;  %v477_v24 = vunpack.c.h.bf16 %v553_v10 }
  0x22   :  { %366 = vst [vmem:[%s1020_s3 + $0xc0] sm:$0xff] %v302_v11  ;;  %v308_v26 = vmax.f32 %v244_v18, 0.0  ;;  %v309_v27 = vmax.f32 %v245_v19, 0.0  ;;  %v480_v28 = vunpack.c.l.bf16 %v554_v15  ;;  %v481_v29 = vunpack.c.h.bf16 %v554_v15 }
  0x23   :  { %367 = vst [vmem:[%s1020_s3 + $0xc8] sm:$0xff] %v303_v12  ;;  %v178_v30 = vmul.f32 %v597_v1, %v476_v23  ;;  %v179_v31 = vmul.f32 %v597_v1, %v477_v24  ;;  %v484_v32 = vunpack.c.l.bf16 %v555_v20  ;;  %v485_v33 = vunpack.c.h.bf16 %v555_v20  ;;  %v561_v20 = vld [vmem:[%s1017_s0 + $0xc0] sm:$0xff]  }
  0x24   :  { %368 = vst [vmem:[%s1020_s3 + $0xd0] sm:$0xff] %v304_v16  ;;  %v180_v34 = vmul.f32 %v597_v1, %v480_v28  ;;  %v181_v35 = vmul.f32 %v597_v1, %v481_v29  ;;  %v488_v36 = vunpack.c.l.bf16 %v556_v25  ;;  %v489_v37 = vunpack.c.h.bf16 %v556_v25  ;;  %v562_v25 = vld [vmem:[%s1017_s0 + $0xc8] sm:$0xff]  }
  0x25   :  { %369 = vst [vmem:[%s1020_s3 + $0xd8] sm:$0xff] %v305_v17  ;;  %v246_v38 = vadd.f32 %v602_v3, %v178_v30  ;;  %v247_v39 = vadd.f32 %v602_v3, %v179_v31  ;;  %v182_v40 = vmul.f32 %v597_v1, %v484_v32  ;;  %v183_v41 = vmul.f32 %v597_v1, %v485_v33  ;;  %v563_v30 = vld [vmem:[%s1017_s0 + $0xd0] sm:$0xff]  }
  0x26   :  { %370 = vst [vmem:[%s1020_s3 + $0xe0] sm:$0xff] %v306_v21  ;;  %v248_v42 = vadd.f32 %v602_v3, %v180_v34  ;;  %v249_v43 = vadd.f32 %v602_v3, %v181_v35  ;;  %v184_v44 = vmul.f32 %v597_v1, %v488_v36  ;;  %v185_v45 = vmul.f32 %v597_v1, %v489_v37  ;;  %v564_v35 = vld [vmem:[%s1017_s0 + $0xd8] sm:$0xff]  }
  0x27   :  { %371 = vst [vmem:[%s1020_s3 + $0xe8] sm:$0xff] %v307_v22  ;;  %v310_v47 = vmax.f32 %v246_v38, 0.0  ;;  %v311_v48 = vmax.f32 %v247_v39, 0.0  ;;  %v250_v49 = vadd.f32 %v602_v3, %v182_v40  ;;  %v251_v50 = vadd.f32 %v602_v3, %v183_v41 }
  0x28   :  { %372 = vst [vmem:[%s1020_s3 + $0xf0] sm:$0xff] %v308_v26  ;;  %v312_v52 = vmax.f32 %v248_v42, 0.0  ;;  %v313_v53 = vmax.f32 %v249_v43, 0.0  ;;  %v252_v54 = vadd.f32 %v602_v3, %v184_v44  ;;  %v253_v55 = vadd.f32 %v602_v3, %v185_v45 }
  0x29   :  { %373 = vst [vmem:[%s1020_s3 + $0xf8] sm:$0xff] %v309_v27  ;;  %v314_v57 = vmax.f32 %v250_v49, 0.0  ;;  %v315_v58 = vmax.f32 %v251_v50, 0.0  ;;  %v492_v59 = vunpack.c.l.bf16 %v557_v46  ;;  %v493_v60 = vunpack.c.h.bf16 %v557_v46 }
  0x2a   :  { %374 = vst [vmem:[%s1020_s3 + $0x100] sm:$0xff] %v310_v47  ;;  %v316_v62 = vmax.f32 %v252_v54, 0.0  ;;  %v317_v63 = vmax.f32 %v253_v55, 0.0  ;;  %v496_v0 = vunpack.c.l.bf16 %v558_v51  ;;  %v497_v2 = vunpack.c.h.bf16 %v558_v51 }
  0x2b   :  { %375 = vst [vmem:[%s1020_s3 + $0x108] sm:$0xff] %v311_v48  ;;  %v186_v4 = vmul.f32 %v597_v1, %v492_v59  ;;  %v187_v5 = vmul.f32 %v597_v1, %v493_v60  ;;  %v500_v6 = vunpack.c.l.bf16 %v559_v56  ;;  %v501_v7 = vunpack.c.h.bf16 %v559_v56  ;;  %v565_v56 = vld [vmem:[%s1017_s0 + $0xe0] sm:$0xff]  }
  0x2c   :  { %376 = vst [vmem:[%s1020_s3 + $0x110] sm:$0xff] %v312_v52  ;;  %v188_v8 = vmul.f32 %v597_v1, %v496_v0  ;;  %v189_v9 = vmul.f32 %v597_v1, %v497_v2  ;;  %v504_v10 = vunpack.c.l.bf16 %v560_v61  ;;  %v505_v11 = vunpack.c.h.bf16 %v560_v61  ;;  %v566_v61 = vld [vmem:[%s1017_s0 + $0xe8] sm:$0xff]  }
  0x2d   :  { %377 = vst [vmem:[%s1020_s3 + $0x118] sm:$0xff] %v313_v53  ;;  %v254_v12 = vadd.f32 %v602_v3, %v186_v4  ;;  %v255_v13 = vadd.f32 %v602_v3, %v187_v5  ;;  %v190_v14 = vmul.f32 %v597_v1, %v500_v6  ;;  %v191_v15 = vmul.f32 %v597_v1, %v501_v7  ;;  %v567_v4 = vld [vmem:[%s1017_s0 + $0xf0] sm:$0xff]  }
  0x2e   :  { %378 = vst [vmem:[%s1020_s3 + $0x120] sm:$0xff] %v314_v57  ;;  %v256_v16 = vadd.f32 %v602_v3, %v188_v8  ;;  %v257_v17 = vadd.f32 %v602_v3, %v189_v9  ;;  %v192_v18 = vmul.f32 %v597_v1, %v504_v10  ;;  %v193_v19 = vmul.f32 %v597_v1, %v505_v11  ;;  %v568_v9 = vld [vmem:[%s1017_s0 + $0xf8] sm:$0xff]  }
  0x2f   :  { %379 = vst [vmem:[%s1020_s3 + $0x128] sm:$0xff] %v315_v58  ;;  %v318_v21 = vmax.f32 %v254_v12, 0.0  ;;  %v319_v22 = vmax.f32 %v255_v13, 0.0  ;;  %v258_v23 = vadd.f32 %v602_v3, %v190_v14  ;;  %v259_v24 = vadd.f32 %v602_v3, %v191_v15 }
  0x30   :  { %380 = vst [vmem:[%s1020_s3 + $0x130] sm:$0xff] %v316_v62  ;;  %v320_v26 = vmax.f32 %v256_v16, 0.0  ;;  %v321_v27 = vmax.f32 %v257_v17, 0.0  ;;  %v260_v28 = vadd.f32 %v602_v3, %v192_v18  ;;  %v261_v29 = vadd.f32 %v602_v3, %v193_v19 }
  0x31   :  { %381 = vst [vmem:[%s1020_s3 + $0x138] sm:$0xff] %v317_v63  ;;  %v322_v31 = vmax.f32 %v258_v23, 0.0  ;;  %v323_v32 = vmax.f32 %v259_v24, 0.0  ;;  %v508_v33 = vunpack.c.l.bf16 %v561_v20  ;;  %v509_v34 = vunpack.c.h.bf16 %v561_v20 }
  0x32   :  { %382 = vst [vmem:[%s1020_s3 + $0x140] sm:$0xff] %v318_v21  ;;  %v324_v36 = vmax.f32 %v260_v28, 0.0  ;;  %v325_v37 = vmax.f32 %v261_v29, 0.0  ;;  %v512_v38 = vunpack.c.l.bf16 %v562_v25  ;;  %v513_v39 = vunpack.c.h.bf16 %v562_v25 }
  0x33   :  { %383 = vst [vmem:[%s1020_s3 + $0x148] sm:$0xff] %v319_v22  ;;  %v194_v40 = vmul.f32 %v597_v1, %v508_v33  ;;  %v195_v41 = vmul.f32 %v597_v1, %v509_v34  ;;  %v516_v42 = vunpack.c.l.bf16 %v563_v30  ;;  %v517_v43 = vunpack.c.h.bf16 %v563_v30 }
  0x34   :  { %384 = vst [vmem:[%s1020_s3 + $0x150] sm:$0xff] %v320_v26  ;;  %v196_v44 = vmul.f32 %v597_v1, %v512_v38  ;;  %v197_v45 = vmul.f32 %v597_v1, %v513_v39  ;;  %v520_v46 = vunpack.c.l.bf16 %v564_v35  ;;  %v521_v47 = vunpack.c.h.bf16 %v564_v35 }
  0x35   :  { %385 = vst [vmem:[%s1020_s3 + $0x158] sm:$0xff] %v321_v27  ;;  %v262_v48 = vadd.f32 %v602_v3, %v194_v40  ;;  %v263_v49 = vadd.f32 %v602_v3, %v195_v41  ;;  %v198_v50 = vmul.f32 %v597_v1, %v516_v42  ;;  %v199_v51 = vmul.f32 %v597_v1, %v517_v43 }
  0x36   :  { %386 = vst [vmem:[%s1020_s3 + $0x160] sm:$0xff] %v322_v31  ;;  %v264_v52 = vadd.f32 %v602_v3, %v196_v44  ;;  %v265_v53 = vadd.f32 %v602_v3, %v197_v45  ;;  %v200_v54 = vmul.f32 %v597_v1, %v520_v46  ;;  %v201_v55 = vmul.f32 %v597_v1, %v521_v47 }
  0x37   :  { %387 = vst [vmem:[%s1020_s3 + $0x168] sm:$0xff] %v323_v32  ;;  %v326_v57 = vmax.f32 %v262_v48, 0.0  ;;  %v327_v58 = vmax.f32 %v263_v49, 0.0  ;;  %v266_v59 = vadd.f32 %v602_v3, %v198_v50  ;;  %v267_v60 = vadd.f32 %v602_v3, %v199_v51 }
  0x38   :  { %388 = vst [vmem:[%s1020_s3 + $0x170] sm:$0xff] %v324_v36  ;;  %v328_v62 = vmax.f32 %v264_v52, 0.0  ;;  %v329_v63 = vmax.f32 %v265_v53, 0.0  ;;  %v268_v0 = vadd.f32 %v602_v3, %v200_v54  ;;  %v269_v2 = vadd.f32 %v602_v3, %v201_v55 }
  0x39   :  { %389 = vst [vmem:[%s1020_s3 + $0x178] sm:$0xff] %v325_v37  ;;  %v330_v5 = vmax.f32 %v266_v59, 0.0  ;;  %v331_v6 = vmax.f32 %v267_v60, 0.0  ;;  %v524_v7 = vunpack.c.l.bf16 %v565_v56  ;;  %v525_v8 = vunpack.c.h.bf16 %v565_v56 }
  0x3a   :  { %390 = vst [vmem:[%s1020_s3 + $0x180] sm:$0xff] %v326_v57  ;;  %v332_v10 = vmax.f32 %v268_v0, 0.0  ;;  %v333_v11 = vmax.f32 %v269_v2, 0.0  ;;  %v528_v12 = vunpack.c.l.bf16 %v566_v61  ;;  %v529_v13 = vunpack.c.h.bf16 %v566_v61 }
  0x3b   :  { %391 = vst [vmem:[%s1020_s3 + $0x188] sm:$0xff] %v327_v58  ;;  %v202_v14 = vmul.f32 %v597_v1, %v524_v7  ;;  %v203_v15 = vmul.f32 %v597_v1, %v525_v8  ;;  %v532_v16 = vunpack.c.l.bf16 %v567_v4  ;;  %v533_v17 = vunpack.c.h.bf16 %v567_v4 }
  0x3c   :  { %392 = vst [vmem:[%s1020_s3 + $0x190] sm:$0xff] %v328_v62  ;;  %v204_v18 = vmul.f32 %v597_v1, %v528_v12  ;;  %v205_v19 = vmul.f32 %v597_v1, %v529_v13  ;;  %v536_v20 = vunpack.c.l.bf16 %v568_v9  ;;  %v537_v21 = vunpack.c.h.bf16 %v568_v9 }
  0x3d   :  { %393 = vst [vmem:[%s1020_s3 + $0x198] sm:$0xff] %v329_v63  ;;  %v270_v22 = vadd.f32 %v602_v3, %v202_v14  ;;  %v271_v23 = vadd.f32 %v602_v3, %v203_v15  ;;  %v206_v24 = vmul.f32 %v597_v1, %v532_v16  ;;  %v207_v25 = vmul.f32 %v597_v1, %v533_v17 }
  0x3e   :  { %394 = vst [vmem:[%s1020_s3 + $0x1a0] sm:$0xff] %v330_v5  ;;  %v272_v26 = vadd.f32 %v602_v3, %v204_v18  ;;  %v273_v27 = vadd.f32 %v602_v3, %v205_v19  ;;  %v208_v28 = vmul.f32 %v597_v1, %v536_v20  ;;  %v209_v29 = vmul.f32 %v597_v1, %v537_v21 }
  0x3f   :  { %395 = vst [vmem:[%s1020_s3 + $0x1a8] sm:$0xff] %v331_v6  ;;  %v334_v30 = vmax.f32 %v270_v22, 0.0  ;;  %v335_v31 = vmax.f32 %v271_v23, 0.0  ;;  %v274_v32 = vadd.f32 %v602_v3, %v206_v24  ;;  %v275_v33 = vadd.f32 %v602_v3, %v207_v25 }
  0x40   :  { %396 = vst [vmem:[%s1020_s3 + $0x1b0] sm:$0xff] %v332_v10  ;;  %v336_v34 = vmax.f32 %v272_v26, 0.0  ;;  %v337_v35 = vmax.f32 %v273_v27, 0.0  ;;  %v276_v36 = vadd.f32 %v602_v3, %v208_v28  ;;  %v277_v1 = vadd.f32 %v602_v3, %v209_v29 }
  0x41   :  { %397 = vst [vmem:[%s1020_s3 + $0x1b8] sm:$0xff] %v333_v11  ;;  %v338_v37 = vmax.f32 %v274_v32, 0.0  ;;  %v339_v38 = vmax.f32 %v275_v33, 0.0 }
  0x42   :  { %398 = vst [vmem:[%s1020_s3 + $0x1c0] sm:$0xff] %v334_v30  ;;  %v340_v39 = vmax.f32 %v276_v36, 0.0  ;;  %v341_v3 = vmax.f32 %v277_v1, 0.0 }
  0x43   :  { %399 = vst [vmem:[%s1020_s3 + $0x1c8] sm:$0xff] %v335_v31 }
  0x44   :  { %400 = vst [vmem:[%s1020_s3 + $0x1d0] sm:$0xff] %v336_v34 }
  0x45   :  { %401 = vst [vmem:[%s1020_s3 + $0x1d8] sm:$0xff] %v337_v35 }
  0x46   :  { %402 = vst [vmem:[%s1020_s3 + $0x1e0] sm:$0xff] %v338_v37 }
  0x47   :  { %403 = vst [vmem:[%s1020_s3 + $0x1e8] sm:$0xff] %v339_v38 }
  0x48   :  { %404 = vst [vmem:[%s1020_s3 + $0x1f0] sm:$0xff] %v340_v39 }
  0x49   :  { %405 = vst [vmem:[%s1020_s3 + $0x1f8] sm:$0xff] %v341_v3 }

</bundles_post_ra>
